<compile_context>
chip_gen: v7x
topology: tpu7x:2x2x1
jax: 0.10.0
libtpu: 0.0.40
codegen_flags: <defaults>
</compile_context>

<pallas_src>
import functools

import jax
import jax.numpy as jnp
from jax.experimental import pallas as pl
from jax.experimental.pallas import tpu as pltpu


def _round_up(x, m):
    return (x + m - 1) // m * m


# ---------------------------------------------------------------------------
# Fused kernel: one grid step = one image.
#   x_ref  : (1, H, Wh, 2*Cin)  f32   (W-pairs folded into channels in glue)
#   w1_ref : (9*Cin, Cp)        compute_dtype   (BN1 scale folded, Cout padded)
#   b1_ref : (1, Cp)            f32
#   w2_ref : (9*Cp, Cp)         compute_dtype   (BN2 scale folded, both dims padded)
#   b2_ref : (1, Cp)            f32
#   o_ref  : (1, Hh, Wh, Cp)    f32
# scratch:
#   pad1_ref : VMEM (Hh+2, Wh+2, Cin) f32   zero-padded pooled activation
#   pad2_ref : VMEM (Hh+2, Wh+2, Cp)  f32   zero-padded conv1 output
# ---------------------------------------------------------------------------
def _fused_encoder_kernel(x_ref, w1_ref, b1_ref, w2_ref, b2_ref, o_ref,
                          pad1_ref, pad2_ref, *, Hh, Wh, Cin, Cp):
    cdt = w1_ref.dtype  # MXU input dtype (f32 or bf16); accumulation is always f32

    # ---- 2x2 max pool, entirely on-chip -----------------------------------
    x = x_ref[0]                                        # (2*Hh, Wh, 2*Cin)
    wm = jnp.maximum(x[:, :, :Cin], x[:, :, Cin:])      # max over W pairs
    wm = wm.reshape(Hh, 2, Wh, Cin)
    pooled = jnp.maximum(wm[:, 0], wm[:, 1])            # (Hh, Wh, Cin)

    # ---- conv1 (3x3, pad=1) + folded BN + ReLU: 9 shifted matmuls ----------
    pad1_ref[...] = jnp.zeros_like(pad1_ref)
    pad1_ref[1:Hh + 1, 1:Wh + 1, :] = pooled

    acc1 = jnp.zeros((Hh * Wh, Cp), jnp.float32)
    for k in range(9):
        kh, kw = k // 3, k % 3
        tap = pad1_ref[kh:kh + Hh, kw:kw + Wh, :].reshape(Hh * Wh, Cin)
        acc1 = acc1 + jnp.dot(tap.astype(cdt),
                              w1_ref[k * Cin:(k + 1) * Cin, :],
                              preferred_element_type=jnp.float32)
    y1 = jnp.maximum(acc1 + b1_ref[...], 0.0)           # (Hh*Wh, Cp) f32

    # ---- conv2 (3x3, pad=1) + folded BN + ReLU -----------------------------
    pad2_ref[...] = jnp.zeros_like(pad2_ref)
    pad2_ref[1:Hh + 1, 1:Wh + 1, :] = y1.reshape(Hh, Wh, Cp)

    acc2 = jnp.zeros((Hh * Wh, Cp), jnp.float32)
    for k in range(9):
        kh, kw = k // 3, k % 3
        tap = pad2_ref[kh:kh + Hh, kw:kw + Wh, :].reshape(Hh * Wh, Cp)
        acc2 = acc2 + jnp.dot(tap.astype(cdt),
                              w2_ref[k * Cp:(k + 1) * Cp, :],
                              preferred_element_type=jnp.float32)
    y2 = jnp.maximum(acc2 + b2_ref[...], 0.0)           # (Hh*Wh, Cp) f32

    o_ref[0] = y2.reshape(Hh, Wh, Cp).astype(o_ref.dtype)


def unet_encoder_forward(x_nchw, w1, scale1, shift1, w2, scale2, shift2,
                         *, compute_dtype=jnp.float32):
    """PyTorch-equivalent UNetEncoder forward. Input/output NCHW.

    compute_dtype: dtype fed to the MXU (weights + activation casts). Use
    jnp.bfloat16 on v5e/v6e/v7x for ~2x compute/bandwidth; accumulation and the
    BN/ReLU epilogue stay f32.
    """
    N, Cin, H, W = x_nchw.shape
    assert H % 2 == 0 and W % 2 == 0, "MaxPool2d(2) fusion assumes even H, W"
    Hh, Wh = H // 2, W // 2
    Cout = w1.shape[0]
    assert w1.shape == (Cout, Cin, 3, 3)
    assert w2.shape == (Cout, Cout, 3, 3)
    Cp = _round_up(Cout, 128)   # lane-dense channel padding

    # Layout glue (boundary only): NCHW -> NHWC, then fold the W-pair of the
    # 2x2 pool into the channel axis (pure row-major reshape, no extra traffic).
    x = jnp.transpose(x_nchw, (0, 2, 3, 1)).astype(jnp.float32)
    xr = x.reshape(N, H, Wh, 2 * Cin)

    # conv1 weights: (Cout,Cin,3,3) -> (9*Cin, Cp), (kh,kw,cin) row order,
    # BN1 scale folded, output channels zero-padded to Cp.
    w1m = jnp.transpose(w1, (2, 3, 1, 0)).reshape(9 * Cin, Cout) * scale1[None, :]
    w1m = jnp.pad(w1m, ((0, 0), (0, Cp - Cout))).astype(compute_dtype)
    b1v = jnp.pad(shift1.reshape(1, Cout), ((0, 0), (0, Cp - Cout))).astype(jnp.float32)

    # conv2 weights: pad both the input-channel and output-channel dims to Cp
    # (padded conv1 channels are exactly zero, so zero weight rows are correct).
    w2m = jnp.transpose(w2, (2, 3, 1, 0)).reshape(9, Cout, Cout) * scale2[None, None, :]
    w2m = jnp.pad(w2m, ((0, 0), (0, Cp - Cout), (0, Cp - Cout)))
    w2m = w2m.reshape(9 * Cp, Cp).astype(compute_dtype)
    b2v = jnp.pad(shift2.reshape(1, Cout), ((0, 0), (0, Cp - Cout))).astype(jnp.float32)

    kernel = functools.partial(_fused_encoder_kernel, Hh=Hh, Wh=Wh, Cin=Cin, Cp=Cp)

    out = pl.pallas_call(
        kernel,
        out_shape=jax.ShapeDtypeStruct((N, Hh, Wh, Cp), jnp.float32),
        grid=(N,),
        in_specs=[
            pl.BlockSpec((1, H, Wh, 2 * Cin), lambda n: (n, 0, 0, 0)),
            pl.BlockSpec((9 * Cin, Cp), lambda n: (0, 0)),
            pl.BlockSpec((1, Cp), lambda n: (0, 0)),
            pl.BlockSpec((9 * Cp, Cp), lambda n: (0, 0)),
            pl.BlockSpec((1, Cp), lambda n: (0, 0)),
        ],
        out_specs=pl.BlockSpec((1, Hh, Wh, Cp), lambda n: (n, 0, 0, 0)),
        scratch_shapes=[
            pltpu.VMEM((Hh + 2, Wh + 2, Cin), jnp.float32),
            pltpu.VMEM((Hh + 2, Wh + 2, Cp), jnp.float32),
        ],
        compiler_params=pltpu.CompilerParams(dimension_semantics=("parallel",)),
    )(xr, w1m, b1v, w2m, b2v)

    out = out[..., :Cout]                       # drop channel padding
    return jnp.transpose(out, (0, 3, 1, 2))     # NHWC -> NCHW


# ---------------------------------------------------------------------------
# Pure-JAX reference (XLA conv / reduce_window) for a correctness check.
# ---------------------------------------------------------------------------
def _ref_forward(x_nchw, w1, s1, b1, w2, s2, b2):
    x = jnp.transpose(x_nchw, (0, 2, 3, 1))
    x = jax.lax.reduce_window(x, -jnp.inf, jax.lax.max,
                              (1, 2, 2, 1), (1, 2, 2, 1), "VALID")

    def cbr(x, w, s, b):
        y = jax.lax.conv_general_dilated(
            x, jnp.transpose(w, (2, 3, 1, 0)),
            window_strides=(1, 1), padding="SAME",
            dimension_numbers=("NHWC", "HWIO", "NHWC"))
        return jnp.maximum(y * s + b, 0.0)

    x = cbr(x, w1, s1, b1)
    x = cbr(x, w2, s2, b2)
    return jnp.transpose(x, (0, 3, 1, 2))


if __name__ == "__main__":
    N, Cin, Cout, H, W = 2, 4, 8, 16, 16
    key = jax.random.PRNGKey(0)
    k1, k2, k3 = jax.random.split(key, 3)

    x_nchw = jax.random.normal(k1, (N, Cin, H, W), jnp.float32)
    w1 = jax.random.normal(k2, (Cout, Cin, 3, 3), jnp.float32) * 0.1
    w2 = jax.random.normal(k3, (Cout, Cout, 3, 3), jnp.float32) * 0.1

    eps = 1e-5

    def bn_folded(c, base):
        gamma = 1.0 + 0.01 * jnp.arange(c, dtype=jnp.float32) + base
        beta = 0.02 * jnp.arange(c, dtype=jnp.float32) - base
        mean = 0.05 * jnp.arange(c, dtype=jnp.float32)
        var = 1.0 + 0.1 * jnp.arange(c, dtype=jnp.float32)
        scale = gamma / jnp.sqrt(var + eps)
        shift = beta - mean * scale
        return scale, shift

    s1, b1 = bn_folded(Cout, 0.0)
    s2, b2 = bn_folded(Cout, 0.1)

    ref = jax.block_until_ready(_ref_forward(x_nchw, w1, s1, b1, w2, s2, b2))

    # f32 MXU-input path: tight tolerance vs. the XLA reference.
    out_f32 = jax.block_until_ready(
        unet_encoder_forward(x_nchw, w1, s1, b1, w2, s2, b2,
                             compute_dtype=jnp.float32))
    assert out_f32.shape == (N, Cout, H // 2, W // 2), out_f32.shape
    assert jnp.allclose(out_f32, ref, atol=1e-3, rtol=1e-3), \
        float(jnp.max(jnp.abs(out_f32 - ref)))

    # bf16 MXU-input path (fast path on v5e/v6e/v7x): f32 accumulation, relaxed tol.
    out_bf16 = jax.block_until_ready(
        unet_encoder_forward(x_nchw, w1, s1, b1, w2, s2, b2,
                             compute_dtype=jnp.bfloat16))
    assert jnp.allclose(out_bf16, ref, atol=5e-2, rtol=5e-2), \
        float(jnp.max(jnp.abs(out_bf16 - ref)))

    print("KERNEL_OK")
</pallas_src>

<mosaic_0001>
module attributes {stable_mosaic.version = 11 : i64} {
  func.func @_fused_encoder_kernel(%arg0: i32, %arg1: memref<1x16x8x8xf32, #tpu.memory_space<vmem>>, %arg2: memref<36x128xf32, #tpu.memory_space<vmem>>, %arg3: memref<1x128xf32, #tpu.memory_space<vmem>>, %arg4: memref<1152x128xf32, #tpu.memory_space<vmem>>, %arg5: memref<1x128xf32, #tpu.memory_space<vmem>>, %arg6: memref<1x8x8x128xf32, #tpu.memory_space<vmem>>, %arg7: memref<10x10x4xf32, #tpu.memory_space<vmem>>, %arg8: memref<10x10x128xf32, #tpu.memory_space<vmem>>) attributes {dimension_semantics = [#tpu.dimension_semantics<parallel>], iteration_bounds = array<i64: 2>, scalar_prefetch = 0 : i64, scratch_operands = 2 : i64, tpu.core_type = #tpu.core_type<tc>, window_params = [{transform_indices = @transform_0, window_bounds = array<i64: 1, 16, 8, 8>}, {pipeline_mode = #tpu.pipeline_mode<synchronous>, transform_indices = @transform_1, window_bounds = array<i64: 36, 128>}, {pipeline_mode = #tpu.pipeline_mode<synchronous>, transform_indices = @transform_2, window_bounds = array<i64: 1, 128>}, {pipeline_mode = #tpu.pipeline_mode<synchronous>, transform_indices = @transform_3, window_bounds = array<i64: 1152, 128>}, {pipeline_mode = #tpu.pipeline_mode<synchronous>, transform_indices = @transform_4, window_bounds = array<i64: 1, 128>}, {transform_indices = @transform_5, window_bounds = array<i64: 1, 8, 8, 128>}]} {
    %c0 = arith.constant 0 : index
    %c0_0 = arith.constant 0 : index
    %c0_1 = arith.constant 0 : index
    %c0_2 = arith.constant 0 : index
    %0 = vector.load %arg1[%c0, %c0_0, %c0_1, %c0_2] : memref<1x16x8x8xf32, #tpu.memory_space<vmem>>, vector<1x16x8x8xf32>
    %1 = vector.shape_cast %0 : vector<1x16x8x8xf32> to vector<16x8x8xf32>
    %2 = vector.extract_strided_slice %1 {offsets = [0, 0, 0], sizes = [16, 8, 4], strides = [1, 1, 1]} : vector<16x8x8xf32> to vector<16x8x4xf32>
    %3 = vector.extract_strided_slice %1 {offsets = [0, 0, 4], sizes = [16, 8, 4], strides = [1, 1, 1]} : vector<16x8x8xf32> to vector<16x8x4xf32>
    %4 = arith.maximumf %2, %3 : vector<16x8x4xf32>
    %5 = vector.shape_cast %4 : vector<16x8x4xf32> to vector<8x2x8x4xf32>
    %6 = vector.extract_strided_slice %5 {offsets = [0, 0, 0, 0], sizes = [8, 1, 8, 4], strides = [1, 1, 1, 1]} : vector<8x2x8x4xf32> to vector<8x1x8x4xf32>
    %7 = vector.shape_cast %6 : vector<8x1x8x4xf32> to vector<8x8x4xf32>
    %8 = vector.extract_strided_slice %5 {offsets = [0, 1, 0, 0], sizes = [8, 1, 8, 4], strides = [1, 1, 1, 1]} : vector<8x2x8x4xf32> to vector<8x1x8x4xf32>
    %9 = vector.shape_cast %8 : vector<8x1x8x4xf32> to vector<8x8x4xf32>
    %10 = arith.maximumf %7, %9 : vector<8x8x4xf32>
    %cst = arith.constant 0.000000e+00 : f32
    %11 = vector.broadcast %cst : f32 to vector<10x10x4xf32>
    %c0_3 = arith.constant 0 : index
    %c0_4 = arith.constant 0 : index
    %c0_5 = arith.constant 0 : index
    %12 = vector.load %arg7[%c0_3, %c0_4, %c0_5] : memref<10x10x4xf32, #tpu.memory_space<vmem>>, vector<10x10x4xf32>
    tpu.vector_store %arg7[%c0_3, %c0_4, %c0_5], %11 {strides = array<i32>} : memref<10x10x4xf32, #tpu.memory_space<vmem>>, vector<10x10x4xf32>,
    %c1 = arith.constant 1 : index
    %c1_6 = arith.constant 1 : index
    %c0_7 = arith.constant 0 : index
    %13 = vector.load %arg7[%c1, %c1_6, %c0_7] : memref<10x10x4xf32, #tpu.memory_space<vmem>>, vector<8x8x4xf32>
    tpu.vector_store %arg7[%c1, %c1_6, %c0_7], %10 {strides = array<i32>} : memref<10x10x4xf32, #tpu.memory_space<vmem>>, vector<8x8x4xf32>,
    %cst_8 = arith.constant 0.000000e+00 : f32
    %14 = vector.broadcast %cst_8 : f32 to vector<64x128xf32>
    %c0_9 = arith.constant 0 : index
    %c0_10 = arith.constant 0 : index
    %c0_11 = arith.constant 0 : index
    %15 = vector.load %arg7[%c0_9, %c0_10, %c0_11] : memref<10x10x4xf32, #tpu.memory_space<vmem>>, vector<8x8x4xf32>
    %16 = vector.shape_cast %15 : vector<8x8x4xf32> to vector<64x4xf32>
    %c0_12 = arith.constant 0 : index
    %c0_13 = arith.constant 0 : index
    %17 = vector.load %arg2[%c0_12, %c0_13] : memref<36x128xf32, #tpu.memory_space<vmem>>, vector<4x128xf32>
    %cst_14 = arith.constant dense<0.000000e+00> : vector<64x128xf32>
    %18 = tpu.matmul %16, %17, %cst_14 {dimension_numbers = #tpu.dot_dimension_numbers<[1], [0], [0], [1], [0, 0, 1, 1], [], []>} : vector<64x4xf32>, vector<4x128xf32>, vector<64x128xf32> -> vector<64x128xf32>
    %19 = arith.addf %14, %18 : vector<64x128xf32>
    %c0_15 = arith.constant 0 : index
    %c1_16 = arith.constant 1 : index
    %c0_17 = arith.constant 0 : index
    %20 = vector.load %arg7[%c0_15, %c1_16, %c0_17] : memref<10x10x4xf32, #tpu.memory_space<vmem>>, vector<8x8x4xf32>
    %21 = vector.shape_cast %20 : vector<8x8x4xf32> to vector<64x4xf32>
    %c4 = arith.constant 4 : index
    %c0_18 = arith.constant 0 : index
    %22 = vector.load %arg2[%c4, %c0_18] : memref<36x128xf32, #tpu.memory_space<vmem>>, vector<4x128xf32>
    %cst_19 = arith.constant dense<0.000000e+00> : vector<64x128xf32>
    %23 = tpu.matmul %21, %22, %cst_19 {dimension_numbers = #tpu.dot_dimension_numbers<[1], [0], [0], [1], [0, 0, 1, 1], [], []>} : vector<64x4xf32>, vector<4x128xf32>, vector<64x128xf32> -> vector<64x128xf32>
    %24 = arith.addf %19, %23 : vector<64x128xf32>
    %c0_20 = arith.constant 0 : index
    %c2 = arith.constant 2 : index
    %c0_21 = arith.constant 0 : index
    %25 = vector.load %arg7[%c0_20, %c2, %c0_21] : memref<10x10x4xf32, #tpu.memory_space<vmem>>, vector<8x8x4xf32>
    %26 = vector.shape_cast %25 : vector<8x8x4xf32> to vector<64x4xf32>
    %c8 = arith.constant 8 : index
    %c0_22 = arith.constant 0 : index
    %27 = vector.load %arg2[%c8, %c0_22] : memref<36x128xf32, #tpu.memory_space<vmem>>, vector<4x128xf32>
    %cst_23 = arith.constant dense<0.000000e+00> : vector<64x128xf32>
    %28 = tpu.matmul %26, %27, %cst_23 {dimension_numbers = #tpu.dot_dimension_numbers<[1], [0], [0], [1], [0, 0, 1, 1], [], []>} : vector<64x4xf32>, vector<4x128xf32>, vector<64x128xf32> -> vector<64x128xf32>
    %29 = arith.addf %24, %28 : vector<64x128xf32>
    %c1_24 = arith.constant 1 : index
    %c0_25 = arith.constant 0 : index
    %c0_26 = arith.constant 0 : index
    %30 = vector.load %arg7[%c1_24, %c0_25, %c0_26] : memref<10x10x4xf32, #tpu.memory_space<vmem>>, vector<8x8x4xf32>
    %31 = vector.shape_cast %30 : vector<8x8x4xf32> to vector<64x4xf32>
    %c12 = arith.constant 12 : index
    %c0_27 = arith.constant 0 : index
    %32 = vector.load %arg2[%c12, %c0_27] : memref<36x128xf32, #tpu.memory_space<vmem>>, vector<4x128xf32>
    %cst_28 = arith.constant dense<0.000000e+00> : vector<64x128xf32>
    %33 = tpu.matmul %31, %32, %cst_28 {dimension_numbers = #tpu.dot_dimension_numbers<[1], [0], [0], [1], [0, 0, 1, 1], [], []>} : vector<64x4xf32>, vector<4x128xf32>, vector<64x128xf32> -> vector<64x128xf32>
    %34 = arith.addf %29, %33 : vector<64x128xf32>
    %c1_29 = arith.constant 1 : index
    %c1_30 = arith.constant 1 : index
    %c0_31 = arith.constant 0 : index
    %35 = vector.load %arg7[%c1_29, %c1_30, %c0_31] : memref<10x10x4xf32, #tpu.memory_space<vmem>>, vector<8x8x4xf32>
    %36 = vector.shape_cast %35 : vector<8x8x4xf32> to vector<64x4xf32>
    %c16 = arith.constant 16 : index
    %c0_32 = arith.constant 0 : index
    %37 = vector.load %arg2[%c16, %c0_32] : memref<36x128xf32, #tpu.memory_space<vmem>>, vector<4x128xf32>
    %cst_33 = arith.constant dense<0.000000e+00> : vector<64x128xf32>
    %38 = tpu.matmul %36, %37, %cst_33 {dimension_numbers = #tpu.dot_dimension_numbers<[1], [0], [0], [1], [0, 0, 1, 1], [], []>} : vector<64x4xf32>, vector<4x128xf32>, vector<64x128xf32> -> vector<64x128xf32>
    %39 = arith.addf %34, %38 : vector<64x128xf32>
    %c1_34 = arith.constant 1 : index
    %c2_35 = arith.constant 2 : index
    %c0_36 = arith.constant 0 : index
    %40 = vector.load %arg7[%c1_34, %c2_35, %c0_36] : memref<10x10x4xf32, #tpu.memory_space<vmem>>, vector<8x8x4xf32>
    %41 = vector.shape_cast %40 : vector<8x8x4xf32> to vector<64x4xf32>
    %c20 = arith.constant 20 : index
    %c0_37 = arith.constant 0 : index
    %42 = vector.load %arg2[%c20, %c0_37] : memref<36x128xf32, #tpu.memory_space<vmem>>, vector<4x128xf32>
    %cst_38 = arith.constant dense<0.000000e+00> : vector<64x128xf32>
    %43 = tpu.matmul %41, %42, %cst_38 {dimension_numbers = #tpu.dot_dimension_numbers<[1], [0], [0], [1], [0, 0, 1, 1], [], []>} : vector<64x4xf32>, vector<4x128xf32>, vector<64x128xf32> -> vector<64x128xf32>
    %44 = arith.addf %39, %43 : vector<64x128xf32>
    %c2_39 = arith.constant 2 : index
    %c0_40 = arith.constant 0 : index
    %c0_41 = arith.constant 0 : index
    %45 = vector.load %arg7[%c2_39, %c0_40, %c0_41] : memref<10x10x4xf32, #tpu.memory_space<vmem>>, vector<8x8x4xf32>
    %46 = vector.shape_cast %45 : vector<8x8x4xf32> to vector<64x4xf32>
    %c24 = arith.constant 24 : index
    %c0_42 = arith.constant 0 : index
    %47 = vector.load %arg2[%c24, %c0_42] : memref<36x128xf32, #tpu.memory_space<vmem>>, vector<4x128xf32>
    %cst_43 = arith.constant dense<0.000000e+00> : vector<64x128xf32>
    %48 = tpu.matmul %46, %47, %cst_43 {dimension_numbers = #tpu.dot_dimension_numbers<[1], [0], [0], [1], [0, 0, 1, 1], [], []>} : vector<64x4xf32>, vector<4x128xf32>, vector<64x128xf32> -> vector<64x128xf32>
    %49 = arith.addf %44, %48 : vector<64x128xf32>
    %c2_44 = arith.constant 2 : index
    %c1_45 = arith.constant 1 : index
    %c0_46 = arith.constant 0 : index
    %50 = vector.load %arg7[%c2_44, %c1_45, %c0_46] : memref<10x10x4xf32, #tpu.memory_space<vmem>>, vector<8x8x4xf32>
    %51 = vector.shape_cast %50 : vector<8x8x4xf32> to vector<64x4xf32>
    %c28 = arith.constant 28 : index
    %c0_47 = arith.constant 0 : index
    %52 = vector.load %arg2[%c28, %c0_47] : memref<36x128xf32, #tpu.memory_space<vmem>>, vector<4x128xf32>
    %cst_48 = arith.constant dense<0.000000e+00> : vector<64x128xf32>
    %53 = tpu.matmul %51, %52, %cst_48 {dimension_numbers = #tpu.dot_dimension_numbers<[1], [0], [0], [1], [0, 0, 1, 1], [], []>} : vector<64x4xf32>, vector<4x128xf32>, vector<64x128xf32> -> vector<64x128xf32>
    %54 = arith.addf %49, %53 : vector<64x128xf32>
    %c2_49 = arith.constant 2 : index
    %c2_50 = arith.constant 2 : index
    %c0_51 = arith.constant 0 : index
    %55 = vector.load %arg7[%c2_49, %c2_50, %c0_51] : memref<10x10x4xf32, #tpu.memory_space<vmem>>, vector<8x8x4xf32>
    %56 = vector.shape_cast %55 : vector<8x8x4xf32> to vector<64x4xf32>
    %c32 = arith.constant 32 : index
    %c0_52 = arith.constant 0 : index
    %57 = vector.load %arg2[%c32, %c0_52] : memref<36x128xf32, #tpu.memory_space<vmem>>, vector<4x128xf32>
    %cst_53 = arith.constant dense<0.000000e+00> : vector<64x128xf32>
    %58 = tpu.matmul %56, %57, %cst_53 {dimension_numbers = #tpu.dot_dimension_numbers<[1], [0], [0], [1], [0, 0, 1, 1], [], []>} : vector<64x4xf32>, vector<4x128xf32>, vector<64x128xf32> -> vector<64x128xf32>
    %59 = arith.addf %54, %58 : vector<64x128xf32>
    %c0_54 = arith.constant 0 : index
    %c0_55 = arith.constant 0 : index
    %60 = vector.load %arg3[%c0_54, %c0_55] : memref<1x128xf32, #tpu.memory_space<vmem>>, vector<1x128xf32>
    %61 = vector.broadcast %60 : vector<1x128xf32> to vector<64x128xf32>
    %62 = arith.addf %59, %61 : vector<64x128xf32>
    %cst_56 = arith.constant 0.000000e+00 : f32
    %63 = vector.broadcast %cst_56 : f32 to vector<64x128xf32>
    %64 = arith.maximumf %62, %63 : vector<64x128xf32>
    %cst_57 = arith.constant 0.000000e+00 : f32
    %65 = vector.broadcast %cst_57 : f32 to vector<10x10x128xf32>
    %c0_58 = arith.constant 0 : index
    %c0_59 = arith.constant 0 : index
    %c0_60 = arith.constant 0 : index
    %66 = vector.load %arg8[%c0_58, %c0_59, %c0_60] : memref<10x10x128xf32, #tpu.memory_space<vmem>>, vector<10x10x128xf32>
    tpu.vector_store %arg8[%c0_58, %c0_59, %c0_60], %65 {strides = array<i32>} : memref<10x10x128xf32, #tpu.memory_space<vmem>>, vector<10x10x128xf32>,
    %67 = vector.shape_cast %64 : vector<64x128xf32> to vector<8x8x128xf32>
    %c1_61 = arith.constant 1 : index
    %c1_62 = arith.constant 1 : index
    %c0_63 = arith.constant 0 : index
    %68 = vector.load %arg8[%c1_61, %c1_62, %c0_63] : memref<10x10x128xf32, #tpu.memory_space<vmem>>, vector<8x8x128xf32>
    tpu.vector_store %arg8[%c1_61, %c1_62, %c0_63], %67 {strides = array<i32>} : memref<10x10x128xf32, #tpu.memory_space<vmem>>, vector<8x8x128xf32>,
    %cst_64 = arith.constant 0.000000e+00 : f32
    %69 = vector.broadcast %cst_64 : f32 to vector<64x128xf32>
    %c0_65 = arith.constant 0 : index
    %c0_66 = arith.constant 0 : index
    %c0_67 = arith.constant 0 : index
    %70 = vector.load %arg8[%c0_65, %c0_66, %c0_67] : memref<10x10x128xf32, #tpu.memory_space<vmem>>, vector<8x8x128xf32>
    %71 = vector.shape_cast %70 : vector<8x8x128xf32> to vector<64x128xf32>
    %c0_68 = arith.constant 0 : index
    %c0_69 = arith.constant 0 : index
    %72 = vector.load %arg4[%c0_68, %c0_69] : memref<1152x128xf32, #tpu.memory_space<vmem>>, vector<128x128xf32>
    %cst_70 = arith.constant dense<0.000000e+00> : vector<64x128xf32>
    %73 = tpu.matmul %71, %72, %cst_70 {dimension_numbers = #tpu.dot_dimension_numbers<[1], [0], [0], [1], [0, 0, 1, 1], [], []>} : vector<64x128xf32>, vector<128x128xf32>, vector<64x128xf32> -> vector<64x128xf32>
    %74 = arith.addf %69, %73 : vector<64x128xf32>
    %c0_71 = arith.constant 0 : index
    %c1_72 = arith.constant 1 : index
    %c0_73 = arith.constant 0 : index
    %75 = vector.load %arg8[%c0_71, %c1_72, %c0_73] : memref<10x10x128xf32, #tpu.memory_space<vmem>>, vector<8x8x128xf32>
    %76 = vector.shape_cast %75 : vector<8x8x128xf32> to vector<64x128xf32>
    %c128 = arith.constant 128 : index
    %c0_74 = arith.constant 0 : index
    %77 = vector.load %arg4[%c128, %c0_74] : memref<1152x128xf32, #tpu.memory_space<vmem>>, vector<128x128xf32>
    %cst_75 = arith.constant dense<0.000000e+00> : vector<64x128xf32>
    %78 = tpu.matmul %76, %77, %cst_75 {dimension_numbers = #tpu.dot_dimension_numbers<[1], [0], [0], [1], [0, 0, 1, 1], [], []>} : vector<64x128xf32>, vector<128x128xf32>, vector<64x128xf32> -> vector<64x128xf32>
    %79 = arith.addf %74, %78 : vector<64x128xf32>
    %c0_76 = arith.constant 0 : index
    %c2_77 = arith.constant 2 : index
    %c0_78 = arith.constant 0 : index
    %80 = vector.load %arg8[%c0_76, %c2_77, %c0_78] : memref<10x10x128xf32, #tpu.memory_space<vmem>>, vector<8x8x128xf32>
    %81 = vector.shape_cast %80 : vector<8x8x128xf32> to vector<64x128xf32>
    %c256 = arith.constant 256 : index
    %c0_79 = arith.constant 0 : index
    %82 = vector.load %arg4[%c256, %c0_79] : memref<1152x128xf32, #tpu.memory_space<vmem>>, vector<128x128xf32>
    %cst_80 = arith.constant dense<0.000000e+00> : vector<64x128xf32>
    %83 = tpu.matmul %81, %82, %cst_80 {dimension_numbers = #tpu.dot_dimension_numbers<[1], [0], [0], [1], [0, 0, 1, 1], [], []>} : vector<64x128xf32>, vector<128x128xf32>, vector<64x128xf32> -> vector<64x128xf32>
    %84 = arith.addf %79, %83 : vector<64x128xf32>
    %c1_81 = arith.constant 1 : index
    %c0_82 = arith.constant 0 : index
    %c0_83 = arith.constant 0 : index
    %85 = vector.load %arg8[%c1_81, %c0_82, %c0_83] : memref<10x10x128xf32, #tpu.memory_space<vmem>>, vector<8x8x128xf32>
    %86 = vector.shape_cast %85 : vector<8x8x128xf32> to vector<64x128xf32>
    %c384 = arith.constant 384 : index
    %c0_84 = arith.constant 0 : index
    %87 = vector.load %arg4[%c384, %c0_84] : memref<1152x128xf32, #tpu.memory_space<vmem>>, vector<128x128xf32>
    %cst_85 = arith.constant dense<0.000000e+00> : vector<64x128xf32>
    %88 = tpu.matmul %86, %87, %cst_85 {dimension_numbers = #tpu.dot_dimension_numbers<[1], [0], [0], [1], [0, 0, 1, 1], [], []>} : vector<64x128xf32>, vector<128x128xf32>, vector<64x128xf32> -> vector<64x128xf32>
    %89 = arith.addf %84, %88 : vector<64x128xf32>
    %c1_86 = arith.constant 1 : index
    %c1_87 = arith.constant 1 : index
    %c0_88 = arith.constant 0 : index
    %90 = vector.load %arg8[%c1_86, %c1_87, %c0_88] : memref<10x10x128xf32, #tpu.memory_space<vmem>>, vector<8x8x128xf32>
    %91 = vector.shape_cast %90 : vector<8x8x128xf32> to vector<64x128xf32>
    %c512 = arith.constant 512 : index
    %c0_89 = arith.constant 0 : index
    %92 = vector.load %arg4[%c512, %c0_89] : memref<1152x128xf32, #tpu.memory_space<vmem>>, vector<128x128xf32>
    %cst_90 = arith.constant dense<0.000000e+00> : vector<64x128xf32>
    %93 = tpu.matmul %91, %92, %cst_90 {dimension_numbers = #tpu.dot_dimension_numbers<[1], [0], [0], [1], [0, 0, 1, 1], [], []>} : vector<64x128xf32>, vector<128x128xf32>, vector<64x128xf32> -> vector<64x128xf32>
    %94 = arith.addf %89, %93 : vector<64x128xf32>
    %c1_91 = arith.constant 1 : index
    %c2_92 = arith.constant 2 : index
    %c0_93 = arith.constant 0 : index
    %95 = vector.load %arg8[%c1_91, %c2_92, %c0_93] : memref<10x10x128xf32, #tpu.memory_space<vmem>>, vector<8x8x128xf32>
    %96 = vector.shape_cast %95 : vector<8x8x128xf32> to vector<64x128xf32>
    %c640 = arith.constant 640 : index
    %c0_94 = arith.constant 0 : index
    %97 = vector.load %arg4[%c640, %c0_94] : memref<1152x128xf32, #tpu.memory_space<vmem>>, vector<128x128xf32>
    %cst_95 = arith.constant dense<0.000000e+00> : vector<64x128xf32>
    %98 = tpu.matmul %96, %97, %cst_95 {dimension_numbers = #tpu.dot_dimension_numbers<[1], [0], [0], [1], [0, 0, 1, 1], [], []>} : vector<64x128xf32>, vector<128x128xf32>, vector<64x128xf32> -> vector<64x128xf32>
    %99 = arith.addf %94, %98 : vector<64x128xf32>
    %c2_96 = arith.constant 2 : index
    %c0_97 = arith.constant 0 : index
    %c0_98 = arith.constant 0 : index
    %100 = vector.load %arg8[%c2_96, %c0_97, %c0_98] : memref<10x10x128xf32, #tpu.memory_space<vmem>>, vector<8x8x128xf32>
    %101 = vector.shape_cast %100 : vector<8x8x128xf32> to vector<64x128xf32>
    %c768 = arith.constant 768 : index
    %c0_99 = arith.constant 0 : index
    %102 = vector.load %arg4[%c768, %c0_99] : memref<1152x128xf32, #tpu.memory_space<vmem>>, vector<128x128xf32>
    %cst_100 = arith.constant dense<0.000000e+00> : vector<64x128xf32>
    %103 = tpu.matmul %101, %102, %cst_100 {dimension_numbers = #tpu.dot_dimension_numbers<[1], [0], [0], [1], [0, 0, 1, 1], [], []>} : vector<64x128xf32>, vector<128x128xf32>, vector<64x128xf32> -> vector<64x128xf32>
    %104 = arith.addf %99, %103 : vector<64x128xf32>
    %c2_101 = arith.constant 2 : index
    %c1_102 = arith.constant 1 : index
    %c0_103 = arith.constant 0 : index
    %105 = vector.load %arg8[%c2_101, %c1_102, %c0_103] : memref<10x10x128xf32, #tpu.memory_space<vmem>>, vector<8x8x128xf32>
    %106 = vector.shape_cast %105 : vector<8x8x128xf32> to vector<64x128xf32>
    %c896 = arith.constant 896 : index
    %c0_104 = arith.constant 0 : index
    %107 = vector.load %arg4[%c896, %c0_104] : memref<1152x128xf32, #tpu.memory_space<vmem>>, vector<128x128xf32>
    %cst_105 = arith.constant dense<0.000000e+00> : vector<64x128xf32>
    %108 = tpu.matmul %106, %107, %cst_105 {dimension_numbers = #tpu.dot_dimension_numbers<[1], [0], [0], [1], [0, 0, 1, 1], [], []>} : vector<64x128xf32>, vector<128x128xf32>, vector<64x128xf32> -> vector<64x128xf32>
    %109 = arith.addf %104, %108 : vector<64x128xf32>
    %c2_106 = arith.constant 2 : index
    %c2_107 = arith.constant 2 : index
    %c0_108 = arith.constant 0 : index
    %110 = vector.load %arg8[%c2_106, %c2_107, %c0_108] : memref<10x10x128xf32, #tpu.memory_space<vmem>>, vector<8x8x128xf32>
    %111 = vector.shape_cast %110 : vector<8x8x128xf32> to vector<64x128xf32>
    %c1024 = arith.constant 1024 : index
    %c0_109 = arith.constant 0 : index
    %112 = vector.load %arg4[%c1024, %c0_109] : memref<1152x128xf32, #tpu.memory_space<vmem>>, vector<128x128xf32>
    %cst_110 = arith.constant dense<0.000000e+00> : vector<64x128xf32>
    %113 = tpu.matmul %111, %112, %cst_110 {dimension_numbers = #tpu.dot_dimension_numbers<[1], [0], [0], [1], [0, 0, 1, 1], [], []>} : vector<64x128xf32>, vector<128x128xf32>, vector<64x128xf32> -> vector<64x128xf32>
    %114 = arith.addf %109, %113 : vector<64x128xf32>
    %c0_111 = arith.constant 0 : index
    %c0_112 = arith.constant 0 : index
    %115 = vector.load %arg5[%c0_111, %c0_112] : memref<1x128xf32, #tpu.memory_space<vmem>>, vector<1x128xf32>
    %116 = vector.broadcast %115 : vector<1x128xf32> to vector<64x128xf32>
    %117 = arith.addf %114, %116 : vector<64x128xf32>
    %cst_113 = arith.constant 0.000000e+00 : f32
    %118 = vector.broadcast %cst_113 : f32 to vector<64x128xf32>
    %119 = arith.maximumf %117, %118 : vector<64x128xf32>
    %120 = vector.shape_cast %119 : vector<64x128xf32> to vector<8x8x128xf32>
    %c0_114 = arith.constant 0 : index
    %c0_115 = arith.constant 0 : index
    %c0_116 = arith.constant 0 : index
    %c0_117 = arith.constant 0 : index
    %121 = vector.load %arg6[%c0_114, %c0_115, %c0_116, %c0_117] : memref<1x8x8x128xf32, #tpu.memory_space<vmem>>, vector<1x8x8x128xf32>
    %122 = vector.shape_cast %121 : vector<1x8x8x128xf32> to vector<8x8x128xf32>
    %123 = vector.shape_cast %120 : vector<8x8x128xf32> to vector<1x8x8x128xf32>
    tpu.vector_store %arg6[%c0_114, %c0_115, %c0_116, %c0_117], %123 {strides = array<i32>} : memref<1x8x8x128xf32, #tpu.memory_space<vmem>>, vector<1x8x8x128xf32>,
    return
  }
  func.func @transform_0(%arg0: i32) -> (i32, i32, i32, i32) {
    %c0_i32 = arith.constant 0 : i32
    %c0_i32_0 = arith.constant 0 : i32
    %c0_i32_1 = arith.constant 0 : i32
    %c0_i32_2 = arith.constant 0 : i32
    return %arg0, %c0_i32, %c0_i32_0, %c0_i32_1 : i32, i32, i32, i32
  }
  func.func @transform_1(%arg0: i32) -> (i32, i32) {
    %c0_i32 = arith.constant 0 : i32
    %c0_i32_0 = arith.constant 0 : i32
    %c0_i32_1 = arith.constant 0 : i32
    return %c0_i32, %c0_i32_0 : i32, i32
  }
  func.func @transform_2(%arg0: i32) -> (i32, i32) {
    %c0_i32 = arith.constant 0 : i32
    %c0_i32_0 = arith.constant 0 : i32
    %c0_i32_1 = arith.constant 0 : i32
    return %c0_i32, %c0_i32_0 : i32, i32
  }
  func.func @transform_3(%arg0: i32) -> (i32, i32) {
    %c0_i32 = arith.constant 0 : i32
    %c0_i32_0 = arith.constant 0 : i32
    %c0_i32_1 = arith.constant 0 : i32
    return %c0_i32, %c0_i32_0 : i32, i32
  }
  func.func @transform_4(%arg0: i32) -> (i32, i32) {
    %c0_i32 = arith.constant 0 : i32
    %c0_i32_0 = arith.constant 0 : i32
    %c0_i32_1 = arith.constant 0 : i32
    return %c0_i32, %c0_i32_0 : i32, i32
  }
  func.func @transform_5(%arg0: i32) -> (i32, i32, i32, i32) {
    %c0_i32 = arith.constant 0 : i32
    %c0_i32_0 = arith.constant 0 : i32
    %c0_i32_1 = arith.constant 0 : i32
    %c0_i32_2 = arith.constant 0 : i32
    return %arg0, %c0_i32, %c0_i32_0, %c0_i32_1 : i32, i32, i32, i32
  }
}

</mosaic_0001>

<bundles_post_ra>
// kernel: tpu_custom_call.1
= control target key start
LH: loop header
LB: loop body
LE: loop exit
PB: predicated region body
PF: predicated region fallthrough
CT: control target
= control target key end

     0   :  { %10 = vsyncpa [#allocation5], 0  ;;  %s5279_s0 = inlined_call_operand.vmem [shape: f32[2,16,8,8], index: 0, kind: input, shape index: {}]   ;;  %s5280_s1 = inlined_call_operand.vmem [shape: f32[36,128], index: 1, kind: input, shape index: {}]   ;;  %s5281_s2 = inlined_call_operand.vmem [shape: f32[1,128], index: 2, kind: input, shape index: {}]   ;;  %s5282_s3 = inlined_call_operand.hbm [shape: f32[1152,128], index: 3, kind: input, shape index: {}]   ;;  %s5283_s4 = inlined_call_operand.vmem [shape: f32[1,128], index: 4, kind: input, shape index: {}]   ;;  %s5284_s5 = inlined_call_operand.hbm [shape: f32[2,8,8,128], index: 5, kind: output, shape index: {}]  }
   0x1   :  { %11 = vsyncpa [#allocation6], 0 }
   0x2   :  { %13 = vsyncpa [#allocation6 + $0x1], 0  ;;  %s4630_s18 = smov 0   ;;  %s4632_s19 = smov 0  }
   0x3   :  { %s4634_s20 = smov 0   ;;  %s4636_s21 = smov 0  }
   0x4 LB: > { %s4651_s22 = sadd.s32 4294967295, %s4590_s21   ;;  %s3089_s23 = sadd.s32 4294967294, %s4590_s21   ;;  %s4590_s21 = sphi %s4636_s21, %s5300_s21   ;;  %s4586_s20 = sphi %s4634_s20, %s5299_s20   ;;  %s4582_s19 = sphi %s4632_s19, %s5298_s19   ;;  %s4578_s18 = sphi %s4630_s18, %s5297_s18  }
   0x5   : > { %s4655_s24 = sadd.s32 1, %s4590_s21   ;;  %s136_s25 = sadd.s32 1, %s4586_s20 }
   0x6   : > { %s133_s26 = ssub.s32 %s4590_s21, %s4655_s24  ;;  %p146_p0 = scmp.ne.s32.totalorder %s4586_s20, %s4582_s19 }
   0x7   : > { %p134_p1 = scmp.eq.s32.totalorder %s133_s26, 0  ;;  %p147_p2 = scmp.eq.s32.totalorder %s4651_s22, 1 }
   0x8   : > { %p152_p3 = scmp.ne.s32.totalorder %s4582_s19, %s4578_s18  ;;  %p153_p4 = scmp.eq.s32.totalorder %s3089_s23, 1 }
   0x9   : > { %s4666_s27 = scalar_select %p134_p1, %s4586_s20, %s136_s25  }
   0xa   : > { %p4668_p5 = por %p147_p2, %p146_p0  ;;  %p4672_p6 = por %p153_p4, %p152_p3 }
   0xb   : > { %p3090_p7 = scmp.ge.s32.totalorder %s4590_s21, 1  ;;  %p160_p8 = scmp.lt.s32.totalorder %s4590_s21, 3 }
   0xc   : > { %s5288_s28 = scalar_select %p4668_p5, 1, 0 }
   0xd   : > { %s5289_s29 = scalar_select %p4672_p6, 1, 0 }
   0xe   : > { %p5285_p9 = scmp.eq.s32.totalorder %s4651_s22, 0  ;;  %p4679_p10 = pnand %p3090_p7, %p160_p8 }
   0xf   : > { %s4592_s6 = smov [#allocation4]   ;;  %s4496_s11 = scalar_lea.hbm %s5282_s3, 18432 }
  0x10   : > { %s5290_s30 = scalar_select %p4679_p10, 1, 0 }
  0x11   : > { %s178_s7 = sshll.u32 %s4592_s6, 4  ;;  %p4445_p11 = pneg %p4679_p10  ;;  %s179_s7 = int_to_ptr.vmem [resolvable:$true] %s178_s7 }
  0x12   : > { %p4497_p13 = scmp.ne.s32.totalorder %s5282_s3, %s4496_s11  ;;  %p4503_p3 = scmp.lt.u32.totalorder %s4496_s11, %s5282_s3 }
  0x13   : > { %p4687_p12 = pnand %p5285_p9, %p4445_p11 }
  0x15   : > { %p4498_p0 = pneg %p4687_p12 }
  0x17   : > { %p4499_p1 = pnand %p4498_p0, %p4497_p13 }
  0x19   : > { %p4500_p2 = pneg %p4499_p1 }
  0x1b   : > { %p4505_p4 = pnand %p4503_p3, %p4500_p2 }
  0x1d   : > { %4508 = shalt.err (!%p4505_p4)
}
  0x1e   : > { %s4509_s16 = scalar_lea.vmem %s179_s7, 18432  ;;  %p4517_p9 = scmp.lt.s32.totalorder %s179_s7, %s179_s7 }
  0x1f   : > { %p4510_p7 = scmp.ne.s32.totalorder %s179_s7, %s4509_s16  ;;  %p4518_p6 = scmp.lt.s32.totalorder %s4509_s16, %s4509_s16 }
  0x21   : > { %p4512_p8 = pnand %p4510_p7, %p4498_p0  ;;  %p4519_p5 = por %p4518_p6, %p4517_p9 }
  0x23   : > { %p4513_p11 = pneg %p4512_p8 }
  0x25   : > { %p4520_p10 = pnand %p4519_p5, %p4513_p11 }
  0x27   : > { %4523 = shalt.err (!%p4520_p10)
}
  0x28   : > { %s4593_s17 = smov 128   ;;  %s4594_s23 = smov 8  }
  0x29   : > { %4448 = dma.hbm_to_vmem [thread:$0]  (!%p4687_p12), %s5282_s3, 18432, %s179_s7, [#allocation5], %s4593_s17, %s4593_s17, %s4594_s23  }
  0x2a   : > { %p5292_p13 = scmp.ne.s32.totalorder %s5290_s30, 0 }
  0x2b   : > { %p5293_p1 = scmp.eq.s32.totalorder (!%p5292_p13), %s4651_s22, 0 }
  0x2c   : > { %205 = sbr.rel (%p5292_p13) target bundleno = 985 (0x3d9), region = 40 }
  0x33   : > { %4569 = dma.done.wait (%p5293_p1), [#allocation5], 18432   ;;  %p5294_p0 = pmov %p5293_p1 }
  0x34   : > { %p233_p5 = scmp.lt.s32.totalorder %s4651_s22, 1  ;;  %vm342_vm0 = vcmask 31744   ;;  %vm344_vm1 = vcmask 25600   ;;  %v4595_v0 = vmov 0.0   ;;  %s4596_s10 = smov 124   ;;  %vm415_vm2 = vcmask 1043456  }
  0x35   : > { %4571 = vsyncadd (%p5294_p0), [#allocation5], 4294948864  ;;  %348 = vst.msk [vmem:[#allocation2 + $0x20] sm:$0xff] %vm342_vm0, %v4595_v0  ;;  %v390_v8 = vld [vmem:[%s5280_s1 + $0x4] sm:$0xf]  ;;  %s230_s15 = sand.u32 1, %s4582_s19  }
  0x36   : > { %343 = vst.msk [vmem:[#allocation2] sm:$0xff] %vm342_vm0, %v4595_v0  ;;  %346 = vst.msk [vmem:[#allocation2 + $0x10] sm:$0xff] %vm342_vm0, %v4595_v0  ;;  %s234_s30 = scalar_select %p233_p5, %s4651_s22, 1  ;;  %3485 = vmatprep.subr.msk.mxu0 %vm415_vm2, %v390_v8  ;;  %v381_v11 = vld [vmem:[%s5280_s1] sm:$0xf] }
  0x37   : > { %350 = vst.msk [vmem:[#allocation2 + $0x30] sm:$0xff] %vm342_vm0, %v4595_v0  ;;  %352 = vst.msk [vmem:[#allocation2 + $0x40] sm:$0xff] %vm342_vm0, %v4595_v0  ;;  %3486 = vmatpush3.msk.msra.mxu0 %vm415_vm2, %v390_v8  ;;  %v664_v44 = vld [vmem:[%s5280_s1 + $0x8] sm:$0xf]  ;;  %s3095_s23 = sshll.u32 %s230_s15, 6  ;;  %s3187_s26 = sshll.u32 %s4651_s22, 10 }
  0x38   : > { %354 = vst.msk [vmem:[#allocation2 + $0x50] sm:$0xff] %vm342_vm0, %v4595_v0  ;;  %356 = vst.msk [vmem:[#allocation2 + $0x60] sm:$0xff] %vm342_vm0, %v4595_v0  ;;  %s3186_s6 = sshll.u32 %s234_s30, 7  ;;  %3499 = vmatprep.subr.msk.mxu0 %vm415_vm2, %v381_v11  ;;  %s5217_s25 = scalar_lea.vmem [#allocation7], %s3095_s23 }
  0x39   : > { %358 = vst.msk [vmem:[#allocation2 + $0x70] sm:$0xff] %vm342_vm0, %v4595_v0  ;;  %360 = vst.msk [vmem:[#allocation2 + $0x80] sm:$0xff] %vm342_vm0, %v4595_v0  ;;  %s4780_s9 = scalar_lea.vmem %s5279_s0, %s3186_s6  ;;  %s3015_s30 = sshll.u32 %s5217_s25, 4  ;;  %s5232_s30 = int_to_ptr.vmem [resolvable:$true] %s3015_s30 }
  0x3a   : > { %362 = vst.msk [vmem:[#allocation2 + $0x90] sm:$0xff] %vm342_vm0, %v4595_v0  ;;  %1723 = vst [vmem:[#allocation3] sm:$0xff] %v4595_v0  ;;  %v240_v1 = vld [vmem:[%s4780_s9 + $0x10] sm:$0xff]  ;;  %v238_v2 = vld [vmem:[%s4780_s9] sm:$0xff]  ;;  %s5230_s8 = scalar_lea.hbm %s5284_s5, %s3187_s26  ;;  %s5238_s22 = scalar_lea.sflag [#allocation6], %s230_s15 }
  0x3b   : > { %1724 = vst [vmem:[#allocation3 + $0x8] sm:$0x3] %v4595_v0  ;;  %1725 = vst [vmem:[#allocation3 + $0x10] sm:$0xff] %v4595_v0  ;;  %274 = vrot.lane.b32.xlu1 %v240_v1, %s4596_s10  ;;  %270 = vrot.lane.b32.xlu0 %v238_v2, %s4596_s10  ;;  %v241_v3 = vld [vmem:[%s4780_s9 + $0x18] sm:$0xff]  ;;  %v239_v4 = vld [vmem:[%s4780_s9 + $0x8] sm:$0xff]  ;;  %p5295_p9 = scmp.ne.s32.totalorder %s5288_s28, 0 }
  0x3c   : > { %1726 = vst [vmem:[#allocation3 + $0x18] sm:$0x3] %v4595_v0  ;;  %1727 = vst [vmem:[#allocation3 + $0x20] sm:$0xff] %v4595_v0  ;;  %v243_v6 = vld [vmem:[%s4780_s9 + $0x28] sm:$0xff]  ;;  %v242_v7 = vld [vmem:[%s4780_s9 + $0x20] sm:$0xff] }
  0x3d   : > { %1728 = vst [vmem:[#allocation3 + $0x28] sm:$0x3] %v4595_v0  ;;  %1729 = vst [vmem:[#allocation3 + $0x30] sm:$0xff] %v4595_v0  ;;  %v245_v9 = vld [vmem:[%s4780_s9 + $0x38] sm:$0xff]  ;;  %v244_v10 = vld [vmem:[%s4780_s9 + $0x30] sm:$0xff] }
  0x3e   : > { %1730 = vst [vmem:[#allocation3 + $0x38] sm:$0x3] %v4595_v0  ;;  %1731 = vst [vmem:[#allocation3 + $0x40] sm:$0xff] %v4595_v0  ;;  %v247_v12 = vld [vmem:[%s4780_s9 + $0x48] sm:$0xff]  ;;  %v246_v13 = vld [vmem:[%s4780_s9 + $0x40] sm:$0xff] }
  0x3f   : > { %1732 = vst [vmem:[#allocation3 + $0x48] sm:$0x3] %v4595_v0  ;;  %1733 = vst [vmem:[#allocation3 + $0x50] sm:$0xff] %v4595_v0  ;;  %276 = vrot.lane.b32.xlu1 %v241_v3, %s4596_s10  ;;  %272 = vrot.lane.b32.xlu0 %v239_v4, %s4596_s10  ;;  %v249_v14 = vld [vmem:[%s4780_s9 + $0x58] sm:$0xff]  ;;  %v248_v15 = vld [vmem:[%s4780_s9 + $0x50] sm:$0xff] }
  0x40   : > { %1734 = vst [vmem:[#allocation3 + $0x58] sm:$0x3] %v4595_v0  ;;  %1735 = vst [vmem:[#allocation3 + $0x60] sm:$0xff] %v4595_v0  ;;  %v251_v16 = vld [vmem:[%s4780_s9 + $0x68] sm:$0xff]  ;;  %v250_v17 = vld [vmem:[%s4780_s9 + $0x60] sm:$0xff] }
  0x41   : > { %1736 = vst [vmem:[#allocation3 + $0x68] sm:$0x3] %v4595_v0  ;;  %1737 = vst [vmem:[#allocation3 + $0x70] sm:$0xff] %v4595_v0  ;;  %v4821_v18 = vld [vmem:[%s4780_s9 + $0x78] sm:$0xff]  ;;  %v4824_v19 = vld [vmem:[%s4780_s9 + $0x70] sm:$0xff]  ;;  %s4524_s9 = scalar_lea.vmem %s5232_s30, 1024 }
  0x42   : > { %1738 = vst [vmem:[#allocation3 + $0x78] sm:$0x3] %v4595_v0  ;;  %1739 = vst [vmem:[#allocation3 + $0x80] sm:$0xff] %v4595_v0  ;;  %p4525_p6 = scmp.ne.s32.totalorder %s5232_s30, %s4524_s9 }
  0x43   : > { %1740 = vst [vmem:[#allocation3 + $0x88] sm:$0x3] %v4595_v0  ;;  %1741 = vst [vmem:[#allocation3 + $0x90] sm:$0xff] %v4595_v0  ;;  %280 = vrot.lane.b32.xlu1 %v243_v6, %s4596_s10  ;;  %278 = vrot.lane.b32.xlu0 %v242_v7, %s4596_s10 }
  0x44   : > { %1742 = vst [vmem:[#allocation3 + $0x98] sm:$0x3] %v4595_v0  ;;  %349 = vst.msk [vmem:[#allocation2 + $0x28] sm:$0x3] %vm344_vm1, %v4595_v0  ;;  %p4526_p10 = pnand %p4525_p6, %p5295_p9 }
  0x45   : > { %345 = vst.msk [vmem:[#allocation2 + $0x8] sm:$0x3] %vm344_vm1, %v4595_v0  ;;  %347 = vst.msk [vmem:[#allocation2 + $0x18] sm:$0x3] %vm344_vm1, %v4595_v0 }
  0x46   : > { %351 = vst.msk [vmem:[#allocation2 + $0x38] sm:$0x3] %vm344_vm1, %v4595_v0  ;;  %353 = vst.msk [vmem:[#allocation2 + $0x48] sm:$0x3] %vm344_vm1, %v4595_v0  ;;  %p4527_p12 = pneg %p4526_p10 }
  0x47   : > { %355 = vst.msk [vmem:[#allocation2 + $0x58] sm:$0x3] %vm344_vm1, %v4595_v0  ;;  %357 = vst.msk [vmem:[#allocation2 + $0x68] sm:$0x3] %vm344_vm1, %v4595_v0  ;;  %284 = vrot.lane.b32.xlu1 %v245_v9, %s4596_s10  ;;  %282 = vrot.lane.b32.xlu0 %v244_v10, %s4596_s10 }
  0x48   : > { %359 = vst.msk [vmem:[#allocation2 + $0x78] sm:$0x3] %vm344_vm1, %v4595_v0  ;;  %361 = vst.msk [vmem:[#allocation2 + $0x88] sm:$0x3] %vm344_vm1, %v4595_v0 }
  0x49   : > { %363 = vst.msk [vmem:[#allocation2 + $0x98] sm:$0x3] %vm344_vm1, %v4595_v0 }
  0x4b   : > { %288 = vrot.lane.b32.xlu1 %v247_v12, %s4596_s10  ;;  %286 = vrot.lane.b32.xlu0 %v246_v13, %s4596_s10 }
  0x4c   : > { %v382_v5 = vld [vmem:[#allocation2 + $0x1] sm:$0xff] }
  0x4d   : > { %3487 = vmatprep.mubr.msk.f32.mxu0 %vm342_vm0, %v382_v5 }
  0x4f   : > { %292 = vrot.lane.b32.xlu1 %v249_v14, %s4596_s10  ;;  %290 = vrot.lane.b32.xlu0 %v248_v15, %s4596_s10 }
  0x53   : > { %296 = vrot.lane.b32.xlu1 %v251_v16, %s4596_s10  ;;  %294 = vrot.lane.b32.xlu0 %v250_v17, %s4596_s10 }
  0x57   : > { %300 = vrot.lane.b32.xlu1 %v4821_v18, %s4596_s10  ;;  %298 = vrot.lane.b32.xlu0 %v4824_v19, %s4596_s10  ;;  %s4597_s10 = smov [#allocation7]  }
  0x58   : > { %s4528_s11 = sshll.u32 %s4597_s10, 4  ;;  %s4529_s11 = int_to_ptr.vmem [resolvable:$false] %s4528_s11 }
  0x59   : > { %s4530_s12 = scalar_lea.vmem %s4529_s11, 2048  ;;  %p4531_p2 = scmp.lt.s32.totalorder %s5232_s30, %s4529_s11 }
  0x5a   : > { %p4532_p3 = scmp.lt.s32.totalorder %s4530_s12, %s4524_s9 }
  0x5c   : > { %p4533_p4 = por %p4532_p3, %p4531_p2 }
  0x5e   : > { %p4534_p7 = pnand %p4533_p4, %p4527_p12 }
  0xad   : > { %v275_v20 = vpop.permute.xlu1 %274  ;;  %v271_v21 = vpop.permute.xlu0 %270 }
  0xae   : > { %v320_v24 = vmax.f32 %v240_v1, %v275_v20  ;;  %v318_v25 = vmax.f32 %v238_v2, %v271_v21  ;;  %v2024_v20 = vld [vmem:[#allocation4 + $0x130] sm:$0xff]  ;;  %v2025_v21 = vld [vmem:[#allocation4 + $0x138] sm:$0xff] }
  0xb1   : > { %v277_v22 = vpop.permute.xlu1 %276  ;;  %v273_v23 = vpop.permute.xlu0 %272 }
  0xb2   : > { %v321_v26 = vmax.f32 %v241_v3, %v277_v22  ;;  %v319_v27 = vmax.f32 %v239_v4, %v273_v23  ;;  %v373_v4 = vld [vmem:[#allocation2] sm:$0xff]  ;;  %v4083_v23 = vpack.c.bf16 %v2025_v21, %v2024_v20  ;;  %v2033_v20 = vld [vmem:[#allocation4 + $0x178] sm:$0xff] }
  0xb4   : > { %v335_v28 = vmax.f32 %v320_v24, %v321_v26  ;;  %v334_v29 = vmax.f32 %v318_v25, %v319_v27  ;;  %v2026_v25 = vld [vmem:[#allocation4 + $0x140] sm:$0xff]  ;;  %v2027_v26 = vld [vmem:[#allocation4 + $0x148] sm:$0xff] }
  0xb5   : > { %v281_v30 = vpop.permute.xlu1 %280  ;;  %v279_v31 = vpop.permute.xlu0 %278  ;;  %v656_v27 = vld [vmem:[#allocation2 + $0x2] sm:$0xff] }
  0xb6   : > { %366 = vst.msk [vmem:[#allocation2 + $0x21] sm:$0xff] %vm342_vm0, %v335_v28  ;;  %365 = vst.msk [vmem:[#allocation2 + $0x11] sm:$0xff] %vm342_vm0, %v334_v29  ;;  %v323_v32 = vmax.f32 %v243_v6, %v281_v30  ;;  %v322_v33 = vmax.f32 %v242_v7, %v279_v31  ;;  %v2018_v6 = vld [vmem:[#allocation4 + $0x100] sm:$0xff]  ;;  %v2019_v7 = vld [vmem:[#allocation4 + $0x108] sm:$0xff]  ;;  %v4087_v29 = vpack.c.bf16 %v2027_v26, %v2026_v25 }
  0xb7   : > { %v4071_v8 = vpack.c.bf16 %v2019_v7, %v2018_v6  ;;  %v962_v31 = vld [vmem:[%s5280_s1 + $0x10] sm:$0xf]  ;;  %v2029_v7 = vld [vmem:[#allocation4 + $0x158] sm:$0xff]  ;;  %v2010_v25 = vld [vmem:[#allocation3 + $0x2] sm:$0xff] }
  0xb8   : > { %v336_v34 = vmax.f32 %v322_v33, %v323_v32  ;;  %v2028_v6 = vld [vmem:[#allocation4 + $0x150] sm:$0xff]  ;;  %3731 = vmatprep.mubr.f32.mxu1 %v2010_v25  ;;  %v3179_v26 = vld [vmem:[%s5281_s2] ss:$0 sm:$0xff]  ;;  %v2166_v25 = vld [vmem:[#allocation4 + $0x1d8] sm:$0xff] }
  0xb9   : > { %v285_v35 = vpop.permute.xlu1 %284  ;;  %v283_v36 = vpop.permute.xlu0 %282  ;;  %4072 = vmatprep.subr.bf16.mxu1 %v4071_v8 }
  0xba   : > { %367 = vst.msk [vmem:[#allocation2 + $0x31] sm:$0xff] %vm342_vm0, %v336_v34  ;;  %v325_v37 = vmax.f32 %v245_v9, %v285_v35  ;;  %v324_v38 = vmax.f32 %v244_v10, %v283_v36  ;;  %v2020_v9 = vld [vmem:[#allocation4 + $0x110] sm:$0xff]  ;;  %v2021_v10 = vld [vmem:[#allocation4 + $0x118] sm:$0xff]  ;;  %4074 = vmatpush3.bf16.msra.mxu1 %v4071_v8 }
  0xbb   : > { %v1798_v8 = vld [vmem:[#allocation4 + $0xf0] sm:$0xff] }
  0xbc   : > { %v337_v39 = vmax.f32 %v324_v38, %v325_v37  ;;  %v1111_v38 = vld [vmem:[%s5280_s1 + $0x14] sm:$0xf] }
  0xbd   : > { %v289_v40 = vpop.permute.xlu1 %288  ;;  %v287_v41 = vpop.permute.xlu0 %286  ;;  %v4833_v42 = vld [vmem:[#allocation2 + $0x11] sm:$0xff]  ;;  %v4835_v43 = vld [vmem:[#allocation2 + $0x21] sm:$0xff] }
  0xbe   : > { %368 = vst.msk [vmem:[#allocation2 + $0x41] sm:$0xff] %vm342_vm0, %v337_v39  ;;  %v327_v45 = vmax.f32 %v247_v12, %v289_v40  ;;  %v326_v46 = vmax.f32 %v246_v13, %v287_v41  ;;  %3488 = vmatmul.mubr.msk.f32.vlgmr.msra.gmra.mrb[0].mxu0 %vm342_vm0, %v4833_v42  ;;  %v813_v12 = vld [vmem:[%s5280_s1 + $0xc] sm:$0xf]  ;;  %v4075_v13 = vpack.c.bf16 %v2021_v10, %v2020_v9  ;;  %v657_v30 = vld [vmem:[#allocation2 + $0x12] sm:$0xff]  ;;  %v4909_v32 = vld [vmem:[#allocation2 + $0x22] sm:$0xff] }
  0xbf   : > { %3490 = vmatprep.mubr.msk.f32.mxu0 %vm342_vm0, %v4835_v43  ;;  %3500 = vmatpush3.msk.msra.mxu0 %vm415_vm2, %v381_v11  ;;  %v374_v11 = vld [vmem:[#allocation2 + $0x10] sm:$0xff]  ;;  %v1261_v40 = vld [vmem:[%s5280_s1 + $0x18] sm:$0xf]  ;;  %v4091_v9 = vpack.c.bf16 %v2029_v7, %v2028_v6 }
  0xc0   : > { %v338_v47 = vmax.f32 %v326_v46, %v327_v45  ;;  %3513 = vmatprep.subr.msk.mxu0 %vm415_vm2, %v664_v44  ;;  %4076 = vmatprep.subr.bf16.mxu1 %v4075_v13  ;;  %v1559_v45 = vld [vmem:[%s5280_s1 + $0x20] sm:$0xf]  ;;  %v1260_v46 = vld [vmem:[#allocation2 + $0x90] sm:$0xff]  ;;  %v1799_v10 = vld [vmem:[#allocation4 + $0xf8] sm:$0xff] }
  0xc1   : > { %v293_v48 = vpop.permute.xlu1 %292  ;;  %v291_v49 = vpop.permute.xlu0 %290  ;;  %v4847_v50 = vld [vmem:[#allocation2 + $0x31] sm:$0xff]  ;;  %4078 = vmatpush3.bf16.msra.mxu1 %v4075_v13  ;;  %v2031_v13 = vld [vmem:[#allocation4 + $0x168] sm:$0xff] }
  0xc2   : > { %369 = vst.msk [vmem:[#allocation2 + $0x51] sm:$0xff] %vm342_vm0, %v338_v47  ;;  %v329_v51 = vmax.f32 %v249_v14, %v293_v48  ;;  %v328_v52 = vmax.f32 %v248_v15, %v291_v49  ;;  %3491 = vmatmul.mubr.msk.f32.gmra.mrb[2].mxu0 %vm342_vm0, %v4847_v50  ;;  %v4878_v14 = vld [vmem:[#allocation2 + $0x20] sm:$0xff]  ;;  %v4915_v33 = vld [vmem:[#allocation2 + $0x32] sm:$0xff]  ;;  %v1785_v48 = vld [vmem:[#allocation4 + $0x88] sm:$0xff] }
  0xc3   : > { %v2022_v15 = vld [vmem:[#allocation4 + $0x120] sm:$0xff] }
  0xc4   : > { %v339_v53 = vmax.f32 %v328_v52, %v329_v51  ;;  %v1784_v47 = vld [vmem:[#allocation4 + $0x80] sm:$0xff]  ;;  %v1786_v51 = vld [vmem:[#allocation4 + $0x90] sm:$0xff] }
  0xc5   : > { %v297_v54 = vpop.permute.xlu1 %296  ;;  %v295_v55 = vpop.permute.xlu0 %294  ;;  %v4852_v56 = vld [vmem:[#allocation2 + $0x41] sm:$0xff]  ;;  %v4007_v49 = vpack.c.bf16 %v1785_v48, %v1784_v47 }
  0xc6   : > { %370 = vst.msk [vmem:[#allocation2 + $0x61] sm:$0xff] %vm342_vm0, %v339_v53  ;;  %v331_v57 = vmax.f32 %v251_v16, %v297_v54  ;;  %v330_v58 = vmax.f32 %v250_v17, %v295_v55  ;;  %3493 = vmatprep.mubr.msk.f32.mxu0 %vm342_vm0, %v4852_v56  ;;  %v2023_v16 = vld [vmem:[#allocation4 + $0x128] sm:$0xff]  ;;  %v4884_v17 = vld [vmem:[#allocation2 + $0x30] sm:$0xff]  ;;  %v1788_v53 = vld [vmem:[#allocation4 + $0xa0] sm:$0xff] }
  0xc7   : > { %v4919_v34 = vld [vmem:[#allocation2 + $0x42] sm:$0xff] }
  0xc8   : > { %v340_v59 = vmax.f32 %v330_v58, %v331_v57  ;;  %v1789_v54 = vld [vmem:[#allocation4 + $0xa8] sm:$0xff]  ;;  %v1791_v57 = vld [vmem:[#allocation4 + $0xb8] sm:$0xff] }
  0xc9   : > { %v4857_v60 = vld [vmem:[#allocation2 + $0x51] sm:$0xff]  ;;  %v301_v61 = vpop.permute.xlu1 %300  ;;  %v299_v62 = vpop.permute.xlu0 %298  ;;  %v4015_v55 = vpack.c.bf16 %v1789_v54, %v1788_v53 }
  0xca   : > { %371 = vst.msk [vmem:[#allocation2 + $0x71] sm:$0xff] %vm342_vm0, %v340_v59  ;;  %3494 = vmatmul.mubr.msk.f32.gmra.mrb[4].mxu0 %vm342_vm0, %v4857_v60  ;;  %v333_v63 = vmax.f32 %v4821_v18, %v301_v61  ;;  %v332_v1 = vmax.f32 %v4824_v19, %v299_v62  ;;  %v4079_v18 = vpack.c.bf16 %v2023_v16, %v2022_v15  ;;  %v4888_v19 = vld [vmem:[#allocation2 + $0x40] sm:$0xff]  ;;  %v4892_v22 = vld [vmem:[#allocation2 + $0x50] sm:$0xff]  ;;  %v1761_v16 = vld [vmem:[#allocation4 + $0x8] sm:$0xff] }
  0xcb   : > { %v4923_v35 = vld [vmem:[#allocation2 + $0x52] sm:$0xff]  ;;  %v1792_v59 = vld [vmem:[#allocation4 + $0xc0] sm:$0xff] }
  0xcc   : > { %v341_v2 = vmax.f32 %v332_v1, %v333_v63  ;;  %4080 = vmatprep.subr.bf16.mxu1 %v4079_v18  ;;  %v1558_v61 = vld [vmem:[#allocation2 + $0x92] sm:$0xff] }
  0xcd   : > { %v4864_v3 = vld [vmem:[#allocation2 + $0x61] sm:$0xff]  ;;  %4082 = vmatpush3.bf16.msra.mxu1 %v4079_v18  ;;  %v1794_v63 = vld [vmem:[#allocation4 + $0xd0] sm:$0xff]  ;;  %v1795_v1 = vld [vmem:[#allocation4 + $0xd8] sm:$0xff] }
  0xce   : > { %3496 = vmatprep.mubr.msk.f32.mxu0 %vm342_vm0, %v4864_v3  ;;  %372 = vst.msk [vmem:[#allocation2 + $0x81] sm:$0xff] %vm342_vm0, %v341_v2  ;;  %v4896_v24 = vld [vmem:[#allocation2 + $0x60] sm:$0xff]  ;;  %4084 = vmatprep.subr.bf16.mxu1 %v4083_v23  ;;  %v4027_v2 = vpack.c.bf16 %v1795_v1, %v1794_v63 }
  0xcf   : > { %v4927_v36 = vld [vmem:[#allocation2 + $0x62] sm:$0xff] }
  0xd1   : > { %v4869_v5 = vld [vmem:[#allocation2 + $0x71] sm:$0xff]  ;;  %4086 = vmatpush3.bf16.msra.mxu1 %v4083_v23  ;;  %v2156_v23 = vld [vmem:[#allocation4 + $0x188] sm:$0xff] }
  0xd2   : > { %3497 = vmatmul.mubr.msk.f32.gmra.mrb[6].mxu0 %vm342_vm0, %v4869_v5  ;;  %v4900_v28 = vld [vmem:[#allocation2 + $0x70] sm:$0xff]  ;;  %4088 = vmatprep.subr.bf16.mxu1 %v4087_v29 }
  0xd3   : > { %3501 = vmatprep.mubr.msk.f32.mxu0 %vm342_vm0, %v373_v4  ;;  %v4931_v37 = vld [vmem:[#allocation2 + $0x72] sm:$0xff]  ;;  %v1797_v4 = vld [vmem:[#allocation4 + $0xe8] sm:$0xff] }
  0xd5   : > { %4090 = vmatpush3.bf16.msra.mxu1 %v4087_v29  ;;  %v812_v39 = vld [vmem:[#allocation2 + $0x80] sm:$0xff] }
  0xd6   : > { %3502 = vmatmul.mubr.msk.f32.vlgmr.msra.gmra.mrb[0].mxu0 %vm342_vm0, %v374_v11  ;;  %v961_v41 = vld [vmem:[#allocation2 + $0x81] sm:$0xff]  ;;  %4092 = vmatprep.subr.bf16.mxu1 %v4091_v9 }
  0xd7   : > { %3514 = vmatpush3.msk.msra.mxu0 %vm415_vm2, %v664_v44  ;;  %3504 = vmatprep.mubr.msk.f32.mxu0 %vm342_vm0, %v4878_v14  ;;  %v1110_v44 = vld [vmem:[#allocation2 + $0x82] sm:$0xff] }
  0xd8   : > { %3527 = vmatprep.subr.msk.mxu0 %vm415_vm2, %v813_v12 }
  0xd9   : > { %4094 = vmatpush3.bf16.msra.mxu1 %v4091_v9  ;;  %v2162_v9 = vld [vmem:[#allocation4 + $0x1b8] sm:$0xff] }
  0xda   : > { %3505 = vmatmul.mubr.msk.f32.gmra.mrb[2].mxu0 %vm342_vm0, %v4884_v17 }
  0xdb   : > { %3507 = vmatprep.mubr.msk.f32.mxu0 %vm342_vm0, %v4888_v19 }
  0xde   : > { %3508 = vmatmul.mubr.msk.f32.gmra.mrb[4].mxu0 %vm342_vm0, %v4892_v22 }
  0xdf   : > { %3510 = vmatprep.mubr.msk.f32.mxu0 %vm342_vm0, %v4896_v24 }
  0xe2   : > { %3511 = vmatmul.mubr.msk.f32.gmra.mrb[6].mxu0 %vm342_vm0, %v4900_v28 }
  0xe3   : > { %3515 = vmatprep.mubr.msk.f32.mxu0 %vm342_vm0, %v656_v27 }
  0xe6   : > { %3516 = vmatmul.mubr.msk.f32.vlgmr.msra.gmra.mrb[0].mxu0 %vm342_vm0, %v657_v30 }
  0xe7   : > { %3528 = vmatpush3.msk.msra.mxu0 %vm415_vm2, %v813_v12  ;;  %3518 = vmatprep.mubr.msk.f32.mxu0 %vm342_vm0, %v4909_v32  ;;  %v2030_v12 = vld [vmem:[#allocation4 + $0x160] sm:$0xff] }
  0xe8   : > { %3541 = vmatprep.subr.msk.mxu0 %vm415_vm2, %v962_v31  ;;  %v4095_v15 = vpack.c.bf16 %v2031_v13, %v2030_v12  ;;  %v1770_v12 = vld [vmem:[#allocation4 + $0x50] sm:$0xff]  ;;  %v1771_v13 = vld [vmem:[#allocation4 + $0x58] sm:$0xff] }
  0xea   : > { %3519 = vmatmul.mubr.msk.f32.gmra.mrb[2].mxu0 %vm342_vm0, %v4915_v33  ;;  %4096 = vmatprep.subr.bf16.mxu1 %v4095_v15 }
  0xeb   : > { %3521 = vmatprep.mubr.msk.f32.mxu0 %vm342_vm0, %v4919_v34  ;;  %4098 = vmatpush3.bf16.msra.mxu1 %v4095_v15 }
  0xee   : > { %3522 = vmatmul.mubr.msk.f32.gmra.mrb[4].mxu0 %vm342_vm0, %v4923_v35 }
  0xef   : > { %3524 = vmatprep.mubr.msk.f32.mxu0 %vm342_vm0, %v4927_v36 }
  0xf2   : > { %3525 = vmatmul.mubr.msk.f32.gmra.mrb[6].mxu0 %vm342_vm0, %v4931_v37 }
  0xf3   : > { %3529 = vmatprep.mubr.msk.f32.mxu0 %vm342_vm0, %v374_v11  ;;  %v4035_v11 = vpack.c.bf16 %v1799_v10, %v1798_v8  ;;  %v2161_v8 = vld [vmem:[#allocation4 + $0x1b0] sm:$0xff] }
  0xf6   : > { %3530 = vmatmul.mubr.msk.f32.vlgmr.msra.gmra.mrb[0].mxu0 %vm342_vm0, %v4878_v14 }
  0xf7   : > { %3542 = vmatpush3.msk.msra.mxu0 %vm415_vm2, %v962_v31  ;;  %3532 = vmatprep.mubr.msk.f32.mxu0 %vm342_vm0, %v4884_v17  ;;  %v1763_v31 = vld [vmem:[#allocation4 + $0x18] sm:$0xff] }
  0xf8   : > { %3555 = vmatprep.subr.msk.mxu0 %vm415_vm2, %v1111_v38 }
  0xfa   : > { %3533 = vmatmul.mubr.msk.f32.gmra.mrb[2].mxu0 %vm342_vm0, %v4888_v19 }
  0xfb   : > { %3535 = vmatprep.mubr.msk.f32.mxu0 %vm342_vm0, %v4892_v22 }
  0xfe   : > { %3536 = vmatmul.mubr.msk.f32.gmra.mrb[4].mxu0 %vm342_vm0, %v4896_v24 }
  0xff   : > { %3538 = vmatprep.mubr.msk.f32.mxu0 %vm342_vm0, %v4900_v28 }
 0x102   : > { %3539 = vmatmul.mubr.msk.f32.gmra.mrb[6].mxu0 %vm342_vm0, %v812_v39 }
 0x103   : > { %3543 = vmatprep.mubr.msk.f32.mxu0 %vm342_vm0, %v4833_v42  ;;  %v1410_v42 = vld [vmem:[%s5280_s1 + $0x1c] sm:$0xf] }
 0x106   : > { %3544 = vmatmul.mubr.msk.f32.vlgmr.msra.gmra.mrb[0].mxu0 %vm342_vm0, %v4835_v43 }
 0x107   : > { %3556 = vmatpush3.msk.msra.mxu0 %vm415_vm2, %v1111_v38  ;;  %3546 = vmatprep.mubr.msk.f32.mxu0 %vm342_vm0, %v4847_v50 }
 0x108   : > { %3569 = vmatprep.subr.msk.mxu0 %vm415_vm2, %v1261_v40 }
 0x10a   : > { %3547 = vmatmul.mubr.msk.f32.gmra.mrb[2].mxu0 %vm342_vm0, %v4852_v56 }
 0x10b   : > { %3549 = vmatprep.mubr.msk.f32.mxu0 %vm342_vm0, %v4857_v60 }
 0x10e   : > { %3550 = vmatmul.mubr.msk.f32.gmra.mrb[4].mxu0 %vm342_vm0, %v4864_v3 }
 0x10f   : > { %3552 = vmatprep.mubr.msk.f32.mxu0 %vm342_vm0, %v4869_v5 }
 0x112   : > { %3553 = vmatmul.mubr.msk.f32.gmra.mrb[6].mxu0 %vm342_vm0, %v961_v41 }
 0x113   : > { %3557 = vmatprep.mubr.msk.f32.mxu0 %vm342_vm0, %v657_v30  ;;  %v1762_v30 = vld [vmem:[#allocation4 + $0x10] sm:$0xff] }
 0x116   : > { %3558 = vmatmul.mubr.msk.f32.vlgmr.msra.gmra.mrb[0].mxu0 %vm342_vm0, %v4909_v32 }
 0x117   : > { %3570 = vmatpush3.msk.msra.mxu0 %vm415_vm2, %v1261_v40  ;;  %3560 = vmatprep.mubr.msk.f32.mxu0 %vm342_vm0, %v4915_v33  ;;  %v1765_v40 = vld [vmem:[#allocation4 + $0x28] sm:$0xff] }
 0x118   : > { %3583 = vmatprep.subr.msk.mxu0 %vm415_vm2, %v1410_v42 }
 0x11a   : > { %3561 = vmatmul.mubr.msk.f32.gmra.mrb[2].mxu0 %vm342_vm0, %v4919_v34 }
 0x11b   : > { %3563 = vmatprep.mubr.msk.f32.mxu0 %vm342_vm0, %v4923_v35 }
 0x11e   : > { %3564 = vmatmul.mubr.msk.f32.gmra.mrb[4].mxu0 %vm342_vm0, %v4927_v36 }
 0x11f   : > { %3566 = vmatprep.mubr.msk.f32.mxu0 %vm342_vm0, %v4931_v37 }
 0x122   : > { %3567 = vmatmul.mubr.msk.f32.gmra.mrb[6].mxu0 %vm342_vm0, %v1110_v44 }
 0x123   : > { %3571 = vmatprep.mubr.msk.f32.mxu0 %vm342_vm0, %v4878_v14  ;;  %v1760_v14 = vld [vmem:[#allocation4] sm:$0xff] }
 0x124   : > { %v4039_v18 = vpack.c.bf16 %v1761_v16, %v1760_v14  ;;  %v4115_v14 = vpack.c.bf16 %v2162_v9, %v2161_v8  ;;  %v2163_v16 = vld [vmem:[#allocation4 + $0x1c0] sm:$0xff] }
 0x125   : > { %v2849_v9 = vld [vmem:[#allocation4 + $0x440] sm:$0xff] }
 0x126   : > { %3572 = vmatmul.mubr.msk.f32.vlgmr.msra.gmra.mrb[0].mxu0 %vm342_vm0, %v4884_v17  ;;  %v1776_v17 = vld [vmem:[#allocation3 + $0x1] sm:$0xff] }
 0x127   : > { %3584 = vmatpush3.msk.msra.mxu0 %vm415_vm2, %v1410_v42  ;;  %3574 = vmatprep.mubr.msk.f32.mxu0 %vm342_vm0, %v4888_v19  ;;  %v2032_v19 = vld [vmem:[#allocation4 + $0x170] sm:$0xff] }
 0x128   : > { %3597 = vmatprep.subr.msk.mxu0 %vm415_vm2, %v1559_v45  ;;  %v4099_v21 = vpack.c.bf16 %v2033_v20, %v2032_v19  ;;  %v1772_v20 = vld [vmem:[#allocation4 + $0x60] sm:$0xff] }
 0x12a   : > { %3575 = vmatmul.mubr.msk.f32.gmra.mrb[2].mxu0 %vm342_vm0, %v4892_v22  ;;  %4100 = vmatprep.subr.bf16.mxu1 %v4099_v21  ;;  %v2155_v22 = vld [vmem:[#allocation4 + $0x180] sm:$0xff] }
 0x12b   : > { %3577 = vmatprep.mubr.msk.f32.mxu0 %vm342_vm0, %v4896_v24  ;;  %4102 = vmatpush3.bf16.msra.mxu1 %v4099_v21  ;;  %v4103_v24 = vpack.c.bf16 %v2156_v23, %v2155_v22  ;;  %v1773_v21 = vld [vmem:[#allocation4 + $0x68] sm:$0xff] }
 0x12d   : > { %4104 = vmatprep.subr.bf16.mxu1 %v4103_v24 }
 0x12e   : > { %3578 = vmatmul.mubr.msk.f32.gmra.mrb[4].mxu0 %vm342_vm0, %v4900_v28 }
 0x12f   : > { %3580 = vmatprep.mubr.msk.f32.mxu0 %vm342_vm0, %v812_v39  ;;  %v1764_v39 = vld [vmem:[#allocation4 + $0x20] sm:$0xff] }
 0x132   : > { %3581 = vmatmul.mubr.msk.f32.gmra.mrb[6].mxu0 %vm342_vm0, %v1260_v46  ;;  %v4047_v46 = vpack.c.bf16 %v1765_v40, %v1764_v39  ;;  %v2170_v39 = vld [vmem:[#allocation4 + $0x1f8] sm:$0xff] }
 0x133   : > { %3585 = vmatprep.mubr.msk.f32.mxu0 %vm342_vm0, %v4835_v43  ;;  %v1409_v43 = vld [vmem:[#allocation2 + $0x91] sm:$0xff] }
 0x136   : > { %3586 = vmatmul.mubr.msk.f32.vlgmr.msra.gmra.mrb[0].mxu0 %vm342_vm0, %v4847_v50  ;;  %v1787_v50 = vld [vmem:[#allocation4 + $0x98] sm:$0xff] }
 0x137   : > { %3598 = vmatpush3.msk.msra.mxu0 %vm415_vm2, %v1559_v45  ;;  %3588 = vmatprep.mubr.msk.f32.mxu0 %vm342_vm0, %v4852_v56  ;;  %v4011_v52 = vpack.c.bf16 %v1787_v50, %v1786_v51  ;;  %v1790_v56 = vld [vmem:[#allocation4 + $0xb0] sm:$0xff] }
 0x138   : > { %4008 = vmatprep.subr.bf16.mxu0 %v4007_v49  ;;  %v4019_v58 = vpack.c.bf16 %v1791_v57, %v1790_v56  ;;  %v1766_v50 = vld [vmem:[#allocation4 + $0x30] sm:$0xff] }
 0x13a   : > { %3589 = vmatmul.mubr.msk.f32.gmra.mrb[2].mxu0 %vm342_vm0, %v4857_v60  ;;  %v1793_v60 = vld [vmem:[#allocation4 + $0xc8] sm:$0xff] }
 0x13b   : > { %3591 = vmatprep.mubr.msk.f32.mxu0 %vm342_vm0, %v4864_v3  ;;  %v4023_v62 = vpack.c.bf16 %v1793_v60, %v1792_v59  ;;  %v1796_v3 = vld [vmem:[#allocation4 + $0xe0] sm:$0xff] }
 0x13c   : > { %v2159_v60 = vld [vmem:[#allocation4 + $0x1a0] sm:$0xff] }
 0x13e   : > { %3592 = vmatmul.mubr.msk.f32.gmra.mrb[4].mxu0 %vm342_vm0, %v4869_v5  ;;  %v4031_v5 = vpack.c.bf16 %v1797_v4, %v1796_v3  ;;  %v1769_v3 = vld [vmem:[#allocation4 + $0x48] sm:$0xff] }
 0x13f   : > { %3594 = vmatprep.mubr.msk.f32.mxu0 %vm342_vm0, %v961_v41 }
 0x142   : > { %3595 = vmatmul.mubr.msk.f32.gmra.mrb[6].mxu0 %vm342_vm0, %v1409_v43  ;;  %v2158_v43 = vld [vmem:[#allocation4 + $0x198] sm:$0xff] }
 0x143   : > { %3599 = vmatprep.mubr.msk.f32.mxu0 %vm342_vm0, %v4909_v32 }
 0x146   : > { %3600 = vmatmul.mubr.msk.f32.vlgmr.msra.gmra.mrb[0].mxu0 %vm342_vm0, %v4915_v33 }
 0x147   : > { %3602 = vmatprep.mubr.msk.f32.mxu0 %vm342_vm0, %v4919_v34  ;;  %4010 = vmatpush3.bf16.msra.mxu0 %v4007_v49  ;;  %v2157_v49 = vld [vmem:[#allocation4 + $0x190] sm:$0xff] }
 0x148   : > { %4012 = vmatprep.subr.bf16.mxu0 %v4011_v52  ;;  %v4107_v56 = vpack.c.bf16 %v2158_v43, %v2157_v49 }
 0x14a   : > { %3603 = vmatmul.mubr.msk.f32.gmra.mrb[2].mxu0 %vm342_vm0, %v4923_v35 }
 0x14b   : > { %3605 = vmatprep.mubr.msk.f32.mxu0 %vm342_vm0, %v4927_v36  ;;  %4014 = vmatpush3.bf16.msra.mxu0 %v4011_v52  ;;  %v4043_v36 = vpack.c.bf16 %v1763_v31, %v1762_v30  ;;  %v1767_v52 = vld [vmem:[#allocation4 + $0x38] sm:$0xff]  ;;  %v2167_v30 = vld [vmem:[#allocation4 + $0x1e0] sm:$0xff]  ;;  %v2168_v31 = vld [vmem:[#allocation4 + $0x1e8] sm:$0xff] }
 0x14c   : > { %4016 = vmatprep.subr.bf16.mxu0 %v4015_v55 }
 0x14e   : > { %3606 = vmatmul.mubr.msk.f32.gmra.mrb[4].mxu0 %vm342_vm0, %v4931_v37 }
 0x14f   : > { %3608 = vmatprep.mubr.msk.f32.mxu0 %vm342_vm0, %v1110_v44  ;;  %4018 = vmatpush3.bf16.msra.mxu0 %v4015_v55 }
 0x150   : > { %4020 = vmatprep.subr.bf16.mxu0 %v4019_v58 }
 0x152   : > { %3609 = vmatmul.mubr.msk.f32.gmra.mrb[6].mxu0 %vm342_vm0, %v1558_v61  ;;  %v2160_v61 = vld [vmem:[#allocation4 + $0x1a8] sm:$0xff] }
 0x153   : > { %4022 = vmatpush3.bf16.msra.mxu0 %v4019_v58  ;;  %3643 = vmatprep.mubr.f32.mxu0 %v1776_v17  ;;  %v4111_v6 = vpack.c.bf16 %v2160_v61, %v2159_v60  ;;  %v2164_v17 = vld [vmem:[#allocation4 + $0x1c8] sm:$0xff]  ;;  %v2847_v61 = vld [vmem:[#allocation4 + $0x430] sm:$0xff] }
 0x154   : > { %4024 = vmatprep.subr.bf16.mxu0 %v4023_v62  ;;  %v4119_v22 = vpack.c.bf16 %v2164_v17, %v2163_v16  ;;  %v2299_v16 = vld [vmem:[#allocation4 + $0x238] sm:$0xff] }
 0x157   : > { %4026 = vmatpush3.bf16.msra.mxu0 %v4023_v62  ;;  %v4051_v62 = vpack.c.bf16 %v1767_v52, %v1766_v50  ;;  %v2846_v50 = vld [vmem:[#allocation4 + $0x428] sm:$0xff] }
 0x158   : > { %4028 = vmatprep.subr.bf16.mxu0 %v4027_v2 }
 0x15b   : > { %4030 = vmatpush3.bf16.msra.mxu0 %v4027_v2  ;;  %v1768_v2 = vld [vmem:[#allocation4 + $0x40] sm:$0xff] }
 0x15c   : > { %4032 = vmatprep.subr.bf16.mxu0 %v4031_v5  ;;  %v4055_v10 = vpack.c.bf16 %v1769_v3, %v1768_v2  ;;  %v2296_v2 = vld [vmem:[#allocation4 + $0x220] sm:$0xff]  ;;  %v2297_v3 = vld [vmem:[#allocation4 + $0x228] sm:$0xff] }
 0x15f   : > { %4034 = vmatpush3.bf16.msra.mxu0 %v4031_v5 }
 0x160   : > { %4036 = vmatprep.subr.bf16.mxu0 %v4035_v11 }
 0x163   : > { %4038 = vmatpush3.bf16.msra.mxu0 %v4035_v11 }
 0x164   : > { %4040 = vmatprep.subr.bf16.mxu0 %v4039_v18 }
 0x219   : > { %v3601_v27 = vpop.f32.mrb[0].mxu0 }
 0x21a   : > { %v1708_v28 = vadd.f32 %v3601_v27, %v3179_v26  ;;  %v1653_v29 = vpop.f32.mrb[1].mxu0  ;;  %v1774_v27 = vld [vmem:[#allocation4 + $0x70] sm:$0xff] }
 0x21b   : > { %v1707_v32 = vadd.f32 %v3179_v26, %v1653_v29 }
 0x21c   : > { %v5044_v33 = vmax.f32 %v1708_v28, 0.0  ;;  %v1775_v28 = vld [vmem:[#allocation4 + $0x78] sm:$0xff] }
 0x21d   : > { %v5046_v34 = vmax.f32 %v1707_v32, 0.0  ;;  %v3604_v35 = vpop.f32.mrb[2].mxu0  ;;  %v4067_v32 = vpack.c.bf16 %v1775_v28, %v1774_v27  ;;  %v2854_v27 = vld [vmem:[#allocation4 + $0x468] sm:$0xff] }
 0x21e   : > { %1745 = vst [vmem:[#allocation3 + $0x21] sm:$0xff] %v5044_v33  ;;  %v1710_v37 = vadd.f32 %v3604_v35, %v3179_v26  ;;  %v1663_v38 = vpop.f32.mrb[3].mxu0  ;;  %v2841_v35 = vld [vmem:[#allocation4 + $0x400] sm:$0xff] }
 0x21f   : > { %1744 = vst [vmem:[#allocation3 + $0x11] sm:$0xff] %v5046_v34  ;;  %v1709_v41 = vadd.f32 %v3179_v26, %v1663_v38  ;;  %3644 = vmatmul.mubr.f32.vlgmr.msra.gmra.mrb[8].mxu0 %v5046_v34  ;;  %v2169_v38 = vld [vmem:[#allocation4 + $0x1f0] sm:$0xff] }
 0x220   : > { %v5051_v42 = vmax.f32 %v1710_v37, 0.0  ;;  %4042 = vmatpush3.bf16.msra.mxu0 %v4039_v18  ;;  %3646 = vmatprep.mubr.f32.mxu0 %v5044_v33  ;;  %v4059_v18 = vpack.c.bf16 %v1771_v13, %v1770_v12  ;;  %v4127_v37 = vpack.c.bf16 %v2168_v31, %v2167_v30  ;;  %v4143_v13 = vpack.c.bf16 %v2297_v3, %v2296_v2  ;;  %v2302_v30 = vld [vmem:[#allocation4 + $0x250] sm:$0xff]  ;;  %v2303_v31 = vld [vmem:[#allocation4 + $0x258] sm:$0xff] }
 0x221   : > { %v5054_v44 = vmax.f32 %v1709_v41, 0.0  ;;  %v3607_v45 = vpop.f32.mrb[4].mxu0  ;;  %4044 = vmatprep.subr.bf16.mxu0 %v4043_v36  ;;  %v2843_v41 = vld [vmem:[#allocation4 + $0x410] sm:$0xff]  ;;  %v2436_v3 = vld [vmem:[#allocation4 + $0x2b8] sm:$0xff] }
 0x222   : > { %1747 = vst [vmem:[#allocation3 + $0x41] sm:$0xff] %v5051_v42  ;;  %v1712_v47 = vadd.f32 %v3607_v45, %v3179_v26  ;;  %v1673_v48 = vpop.f32.mrb[5].mxu0  ;;  %v2844_v45 = vld [vmem:[#allocation4 + $0x418] sm:$0xff]  ;;  %v2435_v2 = vld [vmem:[#allocation4 + $0x2b0] sm:$0xff] }
 0x223   : > { %1746 = vst [vmem:[#allocation3 + $0x31] sm:$0xff] %v5054_v44  ;;  %v1711_v51 = vadd.f32 %v3179_v26, %v1673_v48  ;;  %3647 = vmatmul.mubr.f32.gmra.mrb[10].mxu0 %v5054_v44  ;;  %v2293_v48 = vld [vmem:[#allocation4 + $0x208] sm:$0xff]  ;;  %v5100_v49 = vpack.c.bf16 %v2844_v45, %v2843_v41 }
 0x224   : > { %v5059_v53 = vmax.f32 %v1712_v47, 0.0  ;;  %4046 = vmatpush3.bf16.msra.mxu0 %v4043_v36  ;;  %3649 = vmatprep.mubr.f32.mxu0 %v5051_v42  ;;  %v2842_v36 = vld [vmem:[#allocation4 + $0x408] sm:$0xff]  ;;  %v2292_v47 = vld [vmem:[#allocation4 + $0x200] sm:$0xff] }
 0x225   : > { %v5062_v54 = vmax.f32 %v1711_v51, 0.0  ;;  %v3610_v55 = vpop.f32.mrb[6].mxu0  ;;  %4048 = vmatprep.subr.bf16.mxu0 %v4047_v46  ;;  %v5069_v1 = vld [vmem:[#allocation3 + $0x22] sm:$0xff]  ;;  %v5097_v40 = vpack.c.bf16 %v2842_v36, %v2841_v35  ;;  %v4135_v52 = vpack.c.bf16 %v2293_v48, %v2292_v47  ;;  %v2855_v35 = vld [vmem:[#allocation4 + $0x470] sm:$0xff]  ;;  %v2856_v36 = vld [vmem:[#allocation4 + $0x478] sm:$0xff] }
 0x226   : > { %1749 = vst [vmem:[#allocation3 + $0x61] sm:$0xff] %v5059_v53  ;;  %v1714_v57 = vadd.f32 %v3610_v55, %v3179_v26  ;;  %v1683_v58 = vpop.f32.mrb[7].mxu0  ;;  %v5065_v59 = vld [vmem:[#allocation3 + $0x12] sm:$0xff]  ;;  %v5102_v43 = vld [vmem:[#allocation3 + $0x20] sm:$0xff]  ;;  %v5153_v41 = vpack.c.bf16 %v2856_v36, %v2855_v35 }
 0x227   : > { %1748 = vst [vmem:[#allocation3 + $0x51] sm:$0xff] %v5062_v54  ;;  %v1713_v63 = vadd.f32 %v3179_v26, %v1683_v58  ;;  %3732 = vmatmul.mubr.f32.vlgmr.msra.gmra.mrb[0].mxu1 %v5065_v59  ;;  %3650 = vmatmul.mubr.f32.gmra.mrb[12].mxu0 %v5062_v54  ;;  %v4063_v26 = vpack.c.bf16 %v1773_v21, %v1772_v20  ;;  %v2845_v51 = vld [vmem:[#allocation4 + $0x420] sm:$0xff]  ;;  %v2294_v55 = vld [vmem:[#allocation4 + $0x210] sm:$0xff]  ;;  %v2852_v21 = vld [vmem:[#allocation4 + $0x458] sm:$0xff] }
 0x228   : > { %v5072_v4 = vmax.f32 %v1714_v57, 0.0  ;;  %4106 = vmatpush3.bf16.msra.mxu1 %v4103_v24  ;;  %3734 = vmatprep.mubr.f32.mxu1 %v5069_v1  ;;  %v2165_v24 = vld [vmem:[#allocation4 + $0x1d0] sm:$0xff]  ;;  %v5109_v58 = vpack.c.bf16 %v2846_v50, %v2845_v51  ;;  %v2307_v47 = vld [vmem:[#allocation4 + $0x278] sm:$0xff]  ;;  %v2429_v48 = vld [vmem:[#allocation4 + $0x280] sm:$0xff] }
 0x229   : > { %v5075_v5 = vmax.f32 %v1713_v63, 0.0  ;;  %4108 = vmatprep.subr.bf16.mxu1 %v4107_v56  ;;  %4050 = vmatpush3.bf16.msra.mxu0 %v4047_v46  ;;  %v5083_v11 = vld [vmem:[#allocation3 + $0x42] sm:$0xff]  ;;  %v4123_v29 = vpack.c.bf16 %v2166_v25, %v2165_v24  ;;  %v4131_v46 = vpack.c.bf16 %v2170_v39, %v2169_v38  ;;  %v2851_v20 = vld [vmem:[#allocation4 + $0x450] sm:$0xff] }
 0x22a   : > { %1751 = vst [vmem:[#allocation3 + $0x81] sm:$0xff] %v5072_v4  ;;  %v5078_v7 = vld [vmem:[#allocation3 + $0x32] sm:$0xff]  ;;  %3652 = vmatprep.mubr.f32.mxu0 %v5059_v53  ;;  %4052 = vmatprep.subr.bf16.mxu0 %v4051_v62  ;;  %v5112_v60 = vld [vmem:[#allocation3 + $0x40] sm:$0xff]  ;;  %v2301_v25 = vld [vmem:[#allocation4 + $0x248] sm:$0xff] }
 0x22b   : > { %1750 = vst [vmem:[#allocation3 + $0x71] sm:$0xff] %v5075_v5  ;;  %3735 = vmatmul.mubr.f32.gmra.mrb[2].mxu1 %v5078_v7  ;;  %3653 = vmatmul.mubr.f32.gmra.mrb[14].mxu0 %v5075_v5  ;;  %v5106_v57 = vld [vmem:[#allocation3 + $0x30] sm:$0xff]  ;;  %v2300_v24 = vld [vmem:[#allocation4 + $0x240] sm:$0xff]  ;;  %v2305_v39 = vld [vmem:[#allocation4 + $0x268] sm:$0xff] }
 0x22c   : > { %4110 = vmatpush3.bf16.msra.mxu1 %v4107_v56  ;;  %3737 = vmatprep.mubr.f32.mxu1 %v5083_v11  ;;  %v2295_v56 = vld [vmem:[#allocation4 + $0x218] sm:$0xff]  ;;  %v4151_v28 = vpack.c.bf16 %v2301_v25, %v2300_v24  ;;  %v2304_v38 = vld [vmem:[#allocation4 + $0x260] sm:$0xff]  ;;  %v2430_v51 = vld [vmem:[#allocation4 + $0x288] sm:$0xff] }
 0x22d   : > { %4112 = vmatprep.subr.bf16.mxu1 %v4111_v6  ;;  %4054 = vmatpush3.bf16.msra.mxu0 %v4051_v62  ;;  %v5091_v19 = vld [vmem:[#allocation3 + $0x62] sm:$0xff]  ;;  %v2848_v62 = vld [vmem:[#allocation4 + $0x438] sm:$0xff]  ;;  %v4139_v63 = vpack.c.bf16 %v2295_v56, %v2294_v55  ;;  %v4159_v45 = vpack.c.bf16 %v2305_v39, %v2304_v38  ;;  %v4167_v50 = vpack.c.bf16 %v2430_v51, %v2429_v48  ;;  %v2569_v36 = vld [vmem:[#allocation4 + $0x310] sm:$0xff] }
 0x22e   : > { %v5087_v15 = vld [vmem:[#allocation3 + $0x52] sm:$0xff]  ;;  %4056 = vmatprep.subr.bf16.mxu0 %v4055_v10  ;;  %3687 = vmatprep.mubr.f32.mxu0 %v4595_v0  ;;  %v5124_v12 = vld [vmem:[#allocation3 + $0x60] sm:$0xff]  ;;  %v2442_v24 = vld [vmem:[#allocation4 + $0x2e8] sm:$0xff] }
 0x22f   : > { %3738 = vmatmul.mubr.f32.gmra.mrb[4].mxu1 %v5087_v15  ;;  %v2147_v0 = vld [vmem:[#allocation3 + $0x10] sm:$0xff]  ;;  %v2432_v55 = vld [vmem:[#allocation4 + $0x298] sm:$0xff]  ;;  %v2571_v38 = vld [vmem:[#allocation4 + $0x320] sm:$0xff] }
 0x230   : > { %4114 = vmatpush3.bf16.msra.mxu1 %v4111_v6  ;;  %3740 = vmatprep.mubr.f32.mxu1 %v5091_v19  ;;  %v5118_v6 = vpack.c.bf16 %v2848_v62, %v2847_v61  ;;  %v5121_v8 = vld [vmem:[#allocation3 + $0x50] sm:$0xff]  ;;  %v2433_v61 = vld [vmem:[#allocation4 + $0x2a0] sm:$0xff]  ;;  %v2434_v62 = vld [vmem:[#allocation4 + $0x2a8] sm:$0xff] }
 0x231   : > { %4116 = vmatprep.subr.bf16.mxu1 %v4115_v14  ;;  %4058 = vmatpush3.bf16.msra.mxu0 %v4055_v10  ;;  %v2850_v10 = vld [vmem:[#allocation4 + $0x448] sm:$0xff]  ;;  %v2575_v48 = vld [vmem:[#allocation4 + $0x340] sm:$0xff] }
 0x232   : > { %v5094_v23 = vld [vmem:[#allocation3 + $0x72] sm:$0xff]  ;;  %4060 = vmatprep.subr.bf16.mxu0 %v4059_v18  ;;  %v5130_v17 = vpack.c.bf16 %v2850_v10, %v2849_v9  ;;  %v4179_v9 = vpack.c.bf16 %v2436_v3, %v2435_v2  ;;  %v2437_v10 = vld [vmem:[#allocation4 + $0x2c0] sm:$0xff]  ;;  %v2572_v39 = vld [vmem:[#allocation4 + $0x328] sm:$0xff] }
 0x233   : > { %3741 = vmatmul.mubr.f32.gmra.mrb[6].mxu1 %v5094_v23  ;;  %v2576_v51 = vld [vmem:[#allocation4 + $0x348] sm:$0xff]  ;;  %v2582_v2 = vld [vmem:[#allocation4 + $0x378] sm:$0xff] }
 0x234   : > { %4118 = vmatpush3.bf16.msra.mxu1 %v4115_v14  ;;  %3775 = vmatprep.mubr.f32.mxu1 %v2147_v0  ;;  %v2298_v14 = vld [vmem:[#allocation4 + $0x230] sm:$0xff] }
 0x235   : > { %4120 = vmatprep.subr.bf16.mxu1 %v4119_v22  ;;  %4062 = vmatpush3.bf16.msra.mxu0 %v4059_v18  ;;  %v5133_v18 = vld [vmem:[#allocation3 + $0x70] sm:$0xff] }
 0x236   : > { %4064 = vmatprep.subr.bf16.mxu0 %v4063_v26 }
 0x238   : > { %4122 = vmatpush3.bf16.msra.mxu1 %v4119_v22  ;;  %v4147_v22 = vpack.c.bf16 %v2299_v16, %v2298_v14  ;;  %v2439_v16 = vld [vmem:[#allocation4 + $0x2d0] sm:$0xff] }
 0x239   : > { %4124 = vmatprep.subr.bf16.mxu1 %v4123_v29  ;;  %4066 = vmatpush3.bf16.msra.mxu0 %v4063_v26  ;;  %v5140_v26 = vpack.c.bf16 %v2852_v21, %v2851_v20  ;;  %v2440_v20 = vld [vmem:[#allocation4 + $0x2d8] sm:$0xff] }
 0x23a   : > { %4068 = vmatprep.subr.bf16.mxu0 %v4067_v32  ;;  %v4187_v21 = vpack.c.bf16 %v2440_v20, %v2439_v16  ;;  %v2707_v16 = vld [vmem:[#allocation4 + $0x398] sm:$0xff]  ;;  %v2708_v20 = vld [vmem:[#allocation4 + $0x3a0] sm:$0xff] }
 0x23c   : > { %4126 = vmatpush3.bf16.msra.mxu1 %v4123_v29  ;;  %v5143_v29 = vld [vmem:[#allocation3 + $0x80] sm:$0xff] }
 0x23d   : > { %4128 = vmatprep.subr.bf16.mxu1 %v4127_v37  ;;  %4070 = vmatpush3.bf16.msra.mxu0 %v4067_v32 }
 0x23e   : > { %4264 = vmatprep.subr.bf16.mxu0 %v5097_v40 }
 0x240   : > { %4130 = vmatpush3.bf16.msra.mxu1 %v4127_v37  ;;  %3688 = vmatmul.mubr.f32.vlgmr.msra.gmra.mrb[8].mxu0 %v2147_v0  ;;  %v2853_v0 = vld [vmem:[#allocation4 + $0x460] sm:$0xff]  ;;  %v4155_v37 = vpack.c.bf16 %v2303_v31, %v2302_v30  ;;  %v2568_v31 = vld [vmem:[#allocation4 + $0x308] sm:$0xff] }
 0x241   : > { %4132 = vmatprep.subr.bf16.mxu1 %v4131_v46  ;;  %3690 = vmatprep.mubr.f32.mxu0 %v5102_v43  ;;  %v5148_v32 = vpack.c.bf16 %v2854_v27, %v2853_v0  ;;  %v2443_v0 = vld [vmem:[#allocation4 + $0x2f0] sm:$0xff]  ;;  %v2444_v27 = vld [vmem:[#allocation4 + $0x2f8] sm:$0xff]  ;;  %v2567_v30 = vld [vmem:[#allocation4 + $0x300] sm:$0xff] }
 0x242   : > { %4266 = vmatpush3.bf16.msra.mxu0 %v5097_v40  ;;  %v4199_v35 = vpack.c.bf16 %v2568_v31, %v2567_v30  ;;  %v2715_v30 = vld [vmem:[#allocation4 + $0x3d8] sm:$0xff]  ;;  %v4495_v31 = vld [vmem:[#allocation3] sm:$0xff] }
 0x243   : > { %4268 = vmatprep.subr.bf16.mxu0 %v5100_v49 }
 0x244   : > { %4134 = vmatpush3.bf16.msra.mxu1 %v4131_v46  ;;  %3691 = vmatmul.mubr.f32.gmra.mrb[10].mxu0 %v5106_v57  ;;  %v2306_v46 = vld [vmem:[#allocation4 + $0x270] sm:$0xff] }
 0x245   : > { %4136 = vmatprep.subr.bf16.mxu1 %v4135_v52  ;;  %3693 = vmatprep.mubr.f32.mxu0 %v5112_v60 }
 0x246   : > { %4270 = vmatpush3.bf16.msra.mxu0 %v5100_v49 }
 0x247   : > { %3776 = vmatmul.mubr.f32.vlgmr.msra.gmra.mrb[0].mxu1 %v5102_v43  ;;  %4272 = vmatprep.subr.bf16.mxu0 %v5109_v58 }
 0x248   : > { %3778 = vmatprep.mubr.f32.mxu1 %v5106_v57  ;;  %4138 = vmatpush3.bf16.msra.mxu1 %v4135_v52  ;;  %v2431_v52 = vld [vmem:[#allocation4 + $0x290] sm:$0xff] }
 0x249   : > { %4140 = vmatprep.subr.bf16.mxu1 %v4139_v63  ;;  %3694 = vmatmul.mubr.f32.gmra.mrb[12].mxu0 %v5121_v8  ;;  %v4171_v56 = vpack.c.bf16 %v2432_v55, %v2431_v52  ;;  %v2578_v52 = vld [vmem:[#allocation4 + $0x358] sm:$0xff] }
 0x24a   : > { %3696 = vmatprep.mubr.f32.mxu0 %v5124_v12  ;;  %4274 = vmatpush3.bf16.msra.mxu0 %v5109_v58 }
 0x24b   : > { %3779 = vmatmul.mubr.f32.gmra.mrb[2].mxu1 %v5112_v60  ;;  %4276 = vmatprep.subr.bf16.mxu0 %v5118_v6 }
 0x24c   : > { %3781 = vmatprep.mubr.f32.mxu1 %v5121_v8  ;;  %4142 = vmatpush3.bf16.msra.mxu1 %v4139_v63  ;;  %v4175_v63 = vpack.c.bf16 %v2434_v62, %v2433_v61  ;;  %v2580_v61 = vld [vmem:[#allocation4 + $0x368] sm:$0xff] }
 0x24d   : > { %4144 = vmatprep.subr.bf16.mxu1 %v4143_v13  ;;  %3697 = vmatmul.mubr.f32.gmra.mrb[14].mxu0 %v5133_v18 }
 0x24e   : > { %4278 = vmatpush3.bf16.msra.mxu0 %v5118_v6  ;;  %3995 = vmatprep.mubr.f32.mxu0 %v5069_v1 }
 0x24f   : > { %3782 = vmatmul.mubr.f32.gmra.mrb[4].mxu1 %v5124_v12  ;;  %4280 = vmatprep.subr.bf16.mxu0 %v5130_v17 }
 0x250   : > { %3784 = vmatprep.mubr.f32.mxu1 %v5133_v18  ;;  %4146 = vmatpush3.bf16.msra.mxu1 %v4143_v13  ;;  %v2438_v13 = vld [vmem:[#allocation4 + $0x2c8] sm:$0xff] }
 0x251   : > { %4148 = vmatprep.subr.bf16.mxu1 %v4147_v22  ;;  %v4183_v14 = vpack.c.bf16 %v2438_v13, %v2437_v10  ;;  %v2705_v10 = vld [vmem:[#allocation4 + $0x388] sm:$0xff] }
 0x252   : > { %4282 = vmatpush3.bf16.msra.mxu0 %v5130_v17 }
 0x253   : > { %3785 = vmatmul.mubr.f32.gmra.mrb[6].mxu1 %v5143_v29  ;;  %4284 = vmatprep.subr.bf16.mxu0 %v5140_v26 }
 0x254   : > { %4150 = vmatpush3.bf16.msra.mxu1 %v4147_v22  ;;  %3819 = vmatprep.mubr.f32.mxu1 %v5046_v34  ;;  %v4163_v34 = vpack.c.bf16 %v2307_v47, %v2306_v46  ;;  %v2441_v22 = vld [vmem:[#allocation4 + $0x2e0] sm:$0xff]  ;;  %v2573_v46 = vld [vmem:[#allocation4 + $0x330] sm:$0xff]  ;;  %v2574_v47 = vld [vmem:[#allocation4 + $0x338] sm:$0xff] }
 0x255   : > { %4152 = vmatprep.subr.bf16.mxu1 %v4151_v28  ;;  %v4191_v25 = vpack.c.bf16 %v2442_v24, %v2441_v22  ;;  %v2710_v24 = vld [vmem:[#allocation4 + $0x3b0] sm:$0xff] }
 0x256   : > { %4286 = vmatpush3.bf16.msra.mxu0 %v5140_v26 }
 0x257   : > { %4288 = vmatprep.subr.bf16.mxu0 %v5148_v32 }
 0x258   : > { %4154 = vmatpush3.bf16.msra.mxu1 %v4151_v28  ;;  %v4195_v28 = vpack.c.bf16 %v2444_v27, %v2443_v0  ;;  %v2712_v27 = vld [vmem:[#allocation4 + $0x3c0] sm:$0xff] }
 0x259   : > { %4156 = vmatprep.subr.bf16.mxu1 %v4155_v37 }
 0x25a   : > { %4290 = vmatpush3.bf16.msra.mxu0 %v5148_v32 }
 0x25b   : > { %4292 = vmatprep.subr.bf16.mxu0 %v5153_v41 }
 0x25c   : > { %4158 = vmatpush3.bf16.msra.mxu1 %v4155_v37  ;;  %v2570_v37 = vld [vmem:[#allocation4 + $0x318] sm:$0xff] }
 0x25d   : > { %4160 = vmatprep.subr.bf16.mxu1 %v4159_v45 }
 0x25e   : > { %4294 = vmatpush3.bf16.msra.mxu0 %v5153_v41 }
 0x260   : > { %4162 = vmatpush3.bf16.msra.mxu1 %v4159_v45  ;;  %v4207_v45 = vpack.c.bf16 %v2572_v39, %v2571_v38 }
 0x261   : > { %4164 = vmatprep.subr.bf16.mxu1 %v4163_v34  ;;  %3996 = vmatmul.mubr.f32.vlgmr.msra.gmra.mrb[16].mxu0 %v5078_v7 }
 0x264   : > { %4166 = vmatpush3.bf16.msra.mxu1 %v4163_v34  ;;  %v4211_v34 = vpack.c.bf16 %v2574_v47, %v2573_v46 }
 0x265   : > { %4168 = vmatprep.subr.bf16.mxu1 %v4167_v50 }
 0x267   : > { %3820 = vmatmul.mubr.f32.vlgmr.msra.gmra.mrb[0].mxu1 %v5044_v33 }
 0x268   : > { %3822 = vmatprep.mubr.f32.mxu1 %v5054_v44  ;;  %4170 = vmatpush3.bf16.msra.mxu1 %v4167_v50  ;;  %v2577_v50 = vld [vmem:[#allocation4 + $0x350] sm:$0xff] }
 0x269   : > { %4172 = vmatprep.subr.bf16.mxu1 %v4171_v56  ;;  %v4219_v55 = vpack.c.bf16 %v2578_v52, %v2577_v50 }
 0x26b   : > { %3823 = vmatmul.mubr.f32.gmra.mrb[2].mxu1 %v5051_v42 }
 0x26c   : > { %3825 = vmatprep.mubr.f32.mxu1 %v5062_v54  ;;  %4174 = vmatpush3.bf16.msra.mxu1 %v4171_v56  ;;  %v2579_v56 = vld [vmem:[#allocation4 + $0x360] sm:$0xff] }
 0x26d   : > { %4176 = vmatprep.subr.bf16.mxu1 %v4175_v63  ;;  %v4223_v62 = vpack.c.bf16 %v2580_v61, %v2579_v56 }
 0x26f   : > { %3826 = vmatmul.mubr.f32.gmra.mrb[4].mxu1 %v5059_v53 }
 0x270   : > { %3828 = vmatprep.mubr.f32.mxu1 %v5075_v5  ;;  %4178 = vmatpush3.bf16.msra.mxu1 %v4175_v63  ;;  %v2581_v63 = vld [vmem:[#allocation4 + $0x370] sm:$0xff] }
 0x271   : > { %4180 = vmatprep.subr.bf16.mxu1 %v4179_v9  ;;  %v4227_v3 = vpack.c.bf16 %v2582_v2, %v2581_v63 }
 0x273   : > { %3829 = vmatmul.mubr.f32.gmra.mrb[6].mxu1 %v5072_v4 }
 0x274   : > { %4182 = vmatpush3.bf16.msra.mxu1 %v4179_v9  ;;  %3863 = vmatprep.mubr.f32.mxu1 %v5065_v59  ;;  %v4203_v59 = vpack.c.bf16 %v2570_v37, %v2569_v36  ;;  %v2704_v9 = vld [vmem:[#allocation4 + $0x380] sm:$0xff]  ;;  %v2719_v37 = vld [vmem:[#allocation4 + $0x3f8] sm:$0xff] }
 0x275   : > { %4184 = vmatprep.subr.bf16.mxu1 %v4183_v14  ;;  %v4231_v13 = vpack.c.bf16 %v2705_v10, %v2704_v9 }
 0x278   : > { %4186 = vmatpush3.bf16.msra.mxu1 %v4183_v14  ;;  %v2706_v14 = vld [vmem:[#allocation4 + $0x390] sm:$0xff] }
 0x279   : > { %4188 = vmatprep.subr.bf16.mxu1 %v4187_v21 }
 0x27c   : > { %4190 = vmatpush3.bf16.msra.mxu1 %v4187_v21  ;;  %v2709_v21 = vld [vmem:[#allocation4 + $0x3a8] sm:$0xff] }
 0x27d   : > { %4192 = vmatprep.subr.bf16.mxu1 %v4191_v25  ;;  %v4239_v22 = vpack.c.bf16 %v2709_v21, %v2708_v20 }
 0x280   : > { %4194 = vmatpush3.bf16.msra.mxu1 %v4191_v25  ;;  %v2711_v25 = vld [vmem:[#allocation4 + $0x3b8] sm:$0xff] }
 0x281   : > { %4196 = vmatprep.subr.bf16.mxu1 %v4195_v28  ;;  %v4243_v0 = vpack.c.bf16 %v2711_v25, %v2710_v24 }
 0x284   : > { %4198 = vmatpush3.bf16.msra.mxu1 %v4195_v28  ;;  %v2713_v28 = vld [vmem:[#allocation4 + $0x3c8] sm:$0xff] }
 0x285   : > { %4200 = vmatprep.subr.bf16.mxu1 %v4199_v35 }
 0x287   : > { %3864 = vmatmul.mubr.f32.vlgmr.msra.gmra.mrb[0].mxu1 %v5069_v1  ;;  %v4215_v1 = vpack.c.bf16 %v2576_v51, %v2575_v48 }
 0x288   : > { %3866 = vmatprep.mubr.f32.mxu1 %v5078_v7  ;;  %4202 = vmatpush3.bf16.msra.mxu1 %v4199_v35  ;;  %v5173_v7 = vld [vmem:[#allocation3 + $0x82] sm:$0xff] }
 0x289   : > { %4204 = vmatprep.subr.bf16.mxu1 %v4203_v59  ;;  %v2717_v35 = vld [vmem:[#allocation4 + $0x3e8] sm:$0xff] }
 0x28b   : > { %3867 = vmatmul.mubr.f32.gmra.mrb[2].mxu1 %v5083_v11 }
 0x28c   : > { %3869 = vmatprep.mubr.f32.mxu1 %v5087_v15  ;;  %4206 = vmatpush3.bf16.msra.mxu1 %v4203_v59 }
 0x28d   : > { %4208 = vmatprep.subr.bf16.mxu1 %v4207_v45 }
 0x28f   : > { %3870 = vmatmul.mubr.f32.gmra.mrb[4].mxu1 %v5091_v19 }
 0x290   : > { %3872 = vmatprep.mubr.f32.mxu1 %v5094_v23  ;;  %4210 = vmatpush3.bf16.msra.mxu1 %v4207_v45 }
 0x291   : > { %4212 = vmatprep.subr.bf16.mxu1 %v4211_v34 }
 0x293   : > { %3873 = vmatmul.mubr.f32.gmra.mrb[6].mxu1 %v5173_v7 }
 0x294   : > { %4214 = vmatpush3.bf16.msra.mxu1 %v4211_v34  ;;  %3907 = vmatprep.mubr.f32.mxu1 %v5102_v43  ;;  %v4235_v43 = vpack.c.bf16 %v2707_v16, %v2706_v14 }
 0x295   : > { %4216 = vmatprep.subr.bf16.mxu1 %v4215_v1 }
 0x298   : > { %4218 = vmatpush3.bf16.msra.mxu1 %v4215_v1 }
 0x299   : > { %4220 = vmatprep.subr.bf16.mxu1 %v4219_v55 }
 0x29c   : > { %4222 = vmatpush3.bf16.msra.mxu1 %v4219_v55 }
 0x29d   : > { %4224 = vmatprep.subr.bf16.mxu1 %v4223_v62 }
 0x2a0   : > { %4226 = vmatpush3.bf16.msra.mxu1 %v4223_v62 }
 0x2a1   : > { %4228 = vmatprep.subr.bf16.mxu1 %v4227_v3 }
 0x2a4   : > { %4230 = vmatpush3.bf16.msra.mxu1 %v4227_v3 }
 0x2a5   : > { %4232 = vmatprep.subr.bf16.mxu1 %v4231_v13 }
 0x2a7   : > { %3908 = vmatmul.mubr.f32.vlgmr.msra.gmra.mrb[0].mxu1 %v5106_v57  ;;  %v4247_v57 = vpack.c.bf16 %v2713_v28, %v2712_v27 }
 0x2a8   : > { %3910 = vmatprep.mubr.f32.mxu1 %v5112_v60  ;;  %4234 = vmatpush3.bf16.msra.mxu1 %v4231_v13  ;;  %v2714_v60 = vld [vmem:[#allocation4 + $0x3d0] sm:$0xff] }
 0x2a9   : > { %4236 = vmatprep.subr.bf16.mxu1 %v4235_v43 }
 0x2ab   : > { %3911 = vmatmul.mubr.f32.gmra.mrb[2].mxu1 %v5121_v8  ;;  %v4251_v8 = vpack.c.bf16 %v2715_v30, %v2714_v60 }
 0x2ac   : > { %3913 = vmatprep.mubr.f32.mxu1 %v5124_v12  ;;  %4238 = vmatpush3.bf16.msra.mxu1 %v4235_v43  ;;  %v2716_v12 = vld [vmem:[#allocation4 + $0x3e0] sm:$0xff] }
 0x2ad   : > { %4240 = vmatprep.subr.bf16.mxu1 %v4239_v22  ;;  %v4255_v36 = vpack.c.bf16 %v2717_v35, %v2716_v12 }
 0x2af   : > { %3914 = vmatmul.mubr.f32.gmra.mrb[4].mxu1 %v5133_v18  ;;  %v2718_v18 = vld [vmem:[#allocation4 + $0x3f0] sm:$0xff] }
 0x2b0   : > { %3916 = vmatprep.mubr.f32.mxu1 %v5143_v29  ;;  %4242 = vmatpush3.bf16.msra.mxu1 %v4239_v22  ;;  %v4259_v29 = vpack.c.bf16 %v2719_v37, %v2718_v18 }
 0x2b1   : > { %4244 = vmatprep.subr.bf16.mxu1 %v4243_v0 }
 0x2b3   : > { %3917 = vmatmul.mubr.f32.gmra.mrb[6].mxu1 %v4495_v31 }
 0x2b4   : > { %4246 = vmatpush3.bf16.msra.mxu1 %v4243_v0  ;;  %3951 = vmatprep.mubr.f32.mxu1 %v5044_v33  ;;  %v2703_v33 = vld [vmem:[#allocation3 + $0x91] sm:$0xff] }
 0x2b5   : > { %4248 = vmatprep.subr.bf16.mxu1 %v4247_v57 }
 0x2b8   : > { %4250 = vmatpush3.bf16.msra.mxu1 %v4247_v57 }
 0x2b9   : > { %4252 = vmatprep.subr.bf16.mxu1 %v4251_v8 }
 0x2bc   : > { %4254 = vmatpush3.bf16.msra.mxu1 %v4251_v8 }
 0x2bd   : > { %4256 = vmatprep.subr.bf16.mxu1 %v4255_v36 }
 0x2c0   : > { %4258 = vmatpush3.bf16.msra.mxu1 %v4255_v36 }
 0x2c1   : > { %4260 = vmatprep.subr.bf16.mxu1 %v4259_v29 }
 0x2c4   : > { %4262 = vmatpush3.bf16.msra.mxu1 %v4259_v29 }
 0x2c5   : > { %4295 = vmatprep.subr.bf16.mxu1 %v5097_v40 }
 0x2c7   : > { %3952 = vmatmul.mubr.f32.vlgmr.msra.gmra.mrb[0].mxu1 %v5054_v44 }
 0x2c8   : > { %3954 = vmatprep.mubr.f32.mxu1 %v5051_v42  ;;  %4303 = vmatpush3.bf16.msra.mxu1 %v5097_v40  ;;  %v2840_v42 = vld [vmem:[#allocation3 + $0x92] sm:$0xff] }
 0x2c9   : > { %4296 = vmatprep.subr.bf16.mxu1 %v5100_v49 }
 0x2cb   : > { %3955 = vmatmul.mubr.f32.gmra.mrb[2].mxu1 %v5062_v54 }
 0x2cc   : > { %3957 = vmatprep.mubr.f32.mxu1 %v5059_v53  ;;  %4304 = vmatpush3.bf16.msra.mxu1 %v5100_v49 }
 0x2cd   : > { %4297 = vmatprep.subr.bf16.mxu1 %v5109_v58 }
 0x2cf   : > { %3958 = vmatmul.mubr.f32.gmra.mrb[4].mxu1 %v5075_v5 }
 0x2d0   : > { %3960 = vmatprep.mubr.f32.mxu1 %v5072_v4  ;;  %4305 = vmatpush3.bf16.msra.mxu1 %v5109_v58 }
 0x2d1   : > { %4298 = vmatprep.subr.bf16.mxu1 %v5118_v6 }
 0x2d3   : > { %3961 = vmatmul.mubr.f32.gmra.mrb[6].mxu1 %v2703_v33 }
 0x2d4   : > { %4306 = vmatpush3.bf16.msra.mxu1 %v5118_v6  ;;  %3998 = vmatprep.mubr.f32.mxu1 %v5083_v11 }
 0x2d5   : > { %4299 = vmatprep.subr.bf16.mxu1 %v5130_v17 }
 0x2d8   : > { %4307 = vmatpush3.bf16.msra.mxu1 %v5130_v17 }
 0x2d9   : > { %4300 = vmatprep.subr.bf16.mxu1 %v5140_v26 }
 0x2dc   : > { %4308 = vmatpush3.bf16.msra.mxu1 %v5140_v26 }
 0x2dd   : > { %4301 = vmatprep.subr.bf16.mxu1 %v5148_v32 }
 0x2e0   : > { %4309 = vmatpush3.bf16.msra.mxu1 %v5148_v32 }
 0x2e1   : > { %4302 = vmatprep.subr.bf16.mxu1 %v5153_v41 }
 0x2e4   : > { %4310 = vmatpush3.bf16.msra.mxu1 %v5153_v41 }
 0x2e7   : > { %3999 = vmatmul.mubr.f32.vlgmr.msra.gmra.mrb[2].mxu1 %v5087_v15 }
 0x2e8   : > { %4001 = vmatprep.mubr.f32.mxu1 %v5091_v19 }
 0x2eb   : > { %4002 = vmatmul.mubr.f32.gmra.mrb[4].mxu1 %v5094_v23  ;;  %v3180_v23 = vld [vmem:[%s5283_s4] ss:$0 sm:$0xff] }
 0x2ec   : > { %4004 = vmatprep.mubr.f32.mxu1 %v5173_v7 }
 0x2ef   : > { %4005 = vmatmul.mubr.f32.gmra.mrb[6].mxu1 %v2840_v42 }
 0x313   : > { %v3689_v44 = vpop.f32.mrb[8].mxu0 }
 0x314   : > { %v1971_v53 = vpop.f32.mrb[9].mxu0 }
 0x317   : > { %v3692_v54 = vpop.f32.mrb[10].mxu0 }
 0x318   : > { %v1981_v4 = vpop.f32.mrb[11].mxu0 }
 0x31c   : > { %v3695_v5 = vpop.f32.mrb[12].mxu0 }
 0x31d   : > { %v1991_v11 = vpop.f32.mrb[13].mxu0 }
 0x320   : > { %v3698_v40 = vpop.f32.mrb[14].mxu0 }
 0x321   : > { %v2001_v49 = vpop.f32.mrb[15].mxu0 }
 0x334   : > { %v3997_v58 = vpop.f32.mrb[16].mxu0 }
 0x335   : > { %v2923_v15 = vpop.f32.mrb[17].mxu0 }
 0x39a   : > { %v3953_v6 = vpop.f32.mrb[0].mxu1 }
 0x39b   : > { %v4311_v19 = vadd.f32 %v3953_v6, %v3689_v44  ;;  %v2786_v17 = vpop.f32.mrb[1].mxu1 }
 0x39c   : > { %v4313_v26 = vadd.f32 %v2786_v17, %v1971_v53 }
 0x39d   : > { %v4312_v32 = vadd.f32 %v4311_v19, %v3997_v58 }
 0x39e   : > { %v4314_v41 = vadd.f32 %v4313_v26, %v2923_v15 }
 0x39f   : > { %v2978_v59 = vadd.f32 %v4312_v32, %v3180_v23 }
 0x3a0   : > { %v2977_v38 = vadd.f32 %v4314_v41, %v3180_v23 }
 0x3a1   : > { %v2986_v39 = vmax.f32 %v2978_v59, 0.0 }
 0x3a2   : > { %v2985_v45 = vmax.f32 %v2977_v38, 0.0 }
 0x3a3   : > { %2994 = vst [vmem:[%s5217_s25 + $0x8] sm:$0xff] %v2986_v39 }
 0x3a4   : > { %2993 = vst [vmem:[%s5217_s25] sm:$0xff] %v2985_v45 }
 0x3ba   : > { %v4000_v46 = vpop.f32.mrb[2].mxu1 }
 0x3bb   : > { %v4315_v47 = vadd.f32 %v4000_v46, %v3692_v54  ;;  %v2933_v34 = vpop.f32.mrb[3].mxu1 }
 0x3bc   : > { %v4316_v48 = vadd.f32 %v2933_v34, %v1981_v4 }
 0x3bd   : > { %v2980_v51 = vadd.f32 %v4315_v47, %v3180_v23 }
 0x3be   : > { %v2979_v1 = vadd.f32 %v4316_v48, %v3180_v23  ;;  %v4003_v7 = vpop.f32.mrb[4].mxu1 }
 0x3bf   : > { %v2988_v50 = vmax.f32 %v2980_v51, 0.0  ;;  %v4317_v52 = vadd.f32 %v4003_v7, %v3695_v5  ;;  %v2943_v55 = vpop.f32.mrb[5].mxu1 }
 0x3c0   : > { %v2987_v56 = vmax.f32 %v2979_v1, 0.0  ;;  %v4318_v61 = vadd.f32 %v2943_v55, %v1991_v11 }
 0x3c1   : > { %2996 = vst [vmem:[%s5217_s25 + $0x18] sm:$0xff] %v2988_v50  ;;  %v2982_v62 = vadd.f32 %v4317_v52, %v3180_v23 }
 0x3c2   : > { %2995 = vst [vmem:[%s5217_s25 + $0x10] sm:$0xff] %v2987_v56  ;;  %v2981_v63 = vadd.f32 %v4318_v61, %v3180_v23  ;;  %v4006_v2 = vpop.f32.mrb[6].mxu1 }
 0x3c3   : > { %v2990_v3 = vmax.f32 %v2982_v62, 0.0  ;;  %v4319_v9 = vadd.f32 %v4006_v2, %v3698_v40  ;;  %v2953_v10 = vpop.f32.mrb[7].mxu1 }
 0x3c4   : > { %v2989_v13 = vmax.f32 %v2981_v63, 0.0  ;;  %v4320_v14 = vadd.f32 %v2953_v10, %v2001_v49 }
 0x3c5   : > { %2998 = vst [vmem:[%s5217_s25 + $0x28] sm:$0xff] %v2990_v3  ;;  %v2984_v16 = vadd.f32 %v4319_v9, %v3180_v23 }
 0x3c6   : > { %2997 = vst [vmem:[%s5217_s25 + $0x20] sm:$0xff] %v2989_v13  ;;  %v2983_v43 = vadd.f32 %v4320_v14, %v3180_v23 }
 0x3c7   : > { %v2992_v20 = vmax.f32 %v2984_v16, 0.0 }
 0x3c8   : > { %v2991_v21 = vmax.f32 %v2983_v43, 0.0 }
 0x3c9   : > { %3000 = vst [vmem:[%s5217_s25 + $0x38] sm:$0xff] %v2992_v20 }
 0x3ca   : > { %2999 = vst [vmem:[%s5217_s25 + $0x30] sm:$0xff] %v2991_v21 }
 0x3cb   : > { %4537 = shalt.err (!%p4534_p7)
}
 0x3cc   : > { %s4538_s13 = scalar_lea.hbm %s5230_s8, 1024  ;;  %s4542_s16 = scalar_lea.hbm %s5284_s5, 2048 }
 0x3cd   : > { %p4539_p8 = scmp.ne.s32.totalorder %s5230_s8, %s4538_s13  ;;  %p4543_p1 = scmp.lt.u32.totalorder %s5230_s8, %s5284_s5 }
 0x3ce   : > { %p4544_p0 = scmp.lt.u32.totalorder %s4542_s16, %s4538_s13  ;;  %p4546_p6 = scmp.lt.u32.totalorder %s4538_s13, %s5230_s8 }
 0x3cf   : > { %p4540_p11 = pnand %p4539_p8, %p5295_p9 }
 0x3d0   : > { %p4545_p5 = por %p4544_p0, %p4543_p1 }
 0x3d1   : > { %p4541_p13 = pneg %p4540_p11 }
 0x3d2   : > { %p4547_p10 = por %p4546_p6, %p4545_p5 }
 0x3d4   : > { %p4548_p12 = pnand %p4547_p10, %p4541_p13 }
 0x3d6   : > { %4551 = shalt.err (!%p4548_p12)
}
 0x3d7   : > { %s4598_s25 = smov 128   ;;  %s4599_s26 = smov 8  }
 0x3d8   : > { %4443 = dma.vmem_to_hbm [thread:$0]  (%p5295_p9), %s5232_s30, 1024, %s5230_s8, %s5238_s22, %s4598_s25, %s4598_s25, %s4599_s26  }
 0x3d9 PF: > { %p4455_p2 = scmp.ge.s32.totalorder %s4590_s21, 2  ;;  %s3030_s6 = sand.u32 1, %s4578_s18  }
 0x3da   : > { %p5296_p3 = scmp.ne.s32.totalorder %s5289_s29, 0  ;;  %s3031_s7 = scalar_lea.sflag [#allocation6], %s3030_s6 }
 0x3dc   : > { %p4450_p4 = pnand %p4455_p2, %p5296_p3 }
 0x3de   : > { %4573 = dma.done.wait (!%p4450_p4), %s3031_s7, 1024  }
 0x3df   : > { %4575 = vsyncadd (!%p4450_p4), %s3031_s7, 4294966272  ;;  %p16_p7 = scmp.ge.s32.totalorder %s4655_s24, 4   ;;  %s5297_s18 = smov %s4582_s19 }
 0x3e0   : > { %s5298_s19 = smov %s4586_s20  ;;  %s5299_s20 = smov %s4666_s27 }
 0x3e1   : > { %s5300_s21 = smov %s4655_s24  ;;  %18 = sbr.rel (!%p16_p7) target bundleno = 4 (0x4), region = 84 }
 0x3e8   :  { %3036 = vsyncpa [#allocation5], 1 }
 0x3e9   :  { %3038 = vsyncpa [#allocation5 + $0x1], 1 }
 0x3ea   :  { %3039 = vsyncpa [#allocation6], 1 }
 0x3eb   :  { %3041 = vsyncpa [#allocation6 + $0x1], 1 }

</bundles_post_ra>
